<compile_context>
chip_gen: v6e
topology: v6e:2x2x1
jax: 0.10.0
libtpu: 0.0.40
codegen_flags: <defaults>
</compile_context>

<pallas_src>
import numpy as np
import jax
import jax.numpy as jnp
from jax.experimental import pallas as pl
from jax.experimental.pallas import tpu as pltpu

# ---- configuration (mirrors Hypernetwork(in_dim=4, out_dim=3, layers=(32, 32),
#      context_size=2, hypernetwork_layers=[64, 64]) with all defaults) ----
IN_DIM = 4
OUT_DIM = 3
MNET_HIDDEN = (32, 32)
CTX_SIZE = 2
HNET_HIDDEN = (64, 64)
BATCH = 8

XC_DIM = 8                         # [x(4) | ctx(2) | 1 | 0]  (ones column feeds folded biases)
ONES_COL = IN_DIM + CTX_SIZE       # column of xc that is constant 1
HPAD = 128                         # padded hypernet hidden width: 64 real + carrier lane + zeros
MNET_DIMS = (IN_DIM,) + MNET_HIDDEN + (OUT_DIM,)
# hypnettorch MLP.weight_shapes order: [W1 (h1,in), b1, W2, b2, ..., Wn, bn], row-major flatten
NUM_MNET_WEIGHTS = sum(do * di + do for di, do in zip(MNET_DIMS[:-1], MNET_DIMS[1:]))


def _round_up(v, m):
    return (v + m - 1) // m * m


# 128-lane-aligned layout of the generated (flattened) main-net weights:
#   [W1 @ 0, b1 @ 128, W2 @ 256, b2 @ 1280, W3 @ 1408, b3 @ 1536], padded total = 1664 lanes.
_w_offs, _b_offs, _off = [], [], 0
for _din, _dout in zip(MNET_DIMS[:-1], MNET_DIMS[1:]):
    _off = _round_up(_off, 128)
    _w_offs.append(_off)
    _off += _din * _dout
    _off = _round_up(_off, 128)
    _b_offs.append(_off)
    _off += _dout
W_OFFS = tuple(_w_offs)
B_OFFS = tuple(_b_offs)
NUM_MNET_WEIGHTS_PADDED = _round_up(_off, 128)


def _device_config():
    """Per-generation tiling policy (review: fatter tiles on v5e/v6e, >=2 steps on v7x)."""
    try:
        kind = jax.devices()[0].device_kind.lower()
    except Exception:  # pragma: no cover - defensive
        kind = ""
    if "v7" in kind:
        return dict(max_tile_b=512, vmem_limit=48 * 1024 * 1024, split_cores=True)
    if "v6" in kind:
        return dict(max_tile_b=1024, vmem_limit=64 * 1024 * 1024, split_cores=False)
    if "v5" in kind or "v4" in kind or "v3" in kind:
        return dict(max_tile_b=1024, vmem_limit=64 * 1024 * 1024, split_cores=False)
    # unknown: conservative (v7x-like) settings
    return dict(max_tile_b=512, vmem_limit=48 * 1024 * 1024, split_cores=True)


def _replicate_matrix(din, dout):
    """0/1 (din, dout*din) matrix: (a @ rep)[b, o*din + i] = a[b, i]."""
    m = np.zeros((din, dout * din), np.float32)
    for o in range(dout):
        m[np.arange(din), o * din + np.arange(din)] = 1.0
    return jnp.asarray(m)


def _group_sum_matrix(din, dout):
    """0/1 (dout*din, dout) matrix: sums lane groups of size din."""
    m = np.zeros((dout * din, dout), np.float32)
    for o in range(dout):
        m[o * din:(o + 1) * din, o] = 1.0
    return jnp.asarray(m)


def hypernet_mnet_kernel(xc_ref, wh1_ref, wh2_ref, who_ref,
                         rep1_ref, rep2_ref, rep3_ref,
                         gs1_ref, gs2_ref, gs3_ref, out_ref):
    xc = xc_ref[...]                                     # (TB, 8) f32: [x | ctx | 1 | 0]

    # --- hypernetwork: context -> flattened (lane-aligned) main-net weights.
    # All bias adds are folded into the matmuls via the ones column / carrier lane, so this
    # stage is three MXU matmuls + two relus (no VPU broadcast adds, no rank-1 updates).
    h = jnp.maximum(jnp.dot(xc, wh1_ref[...], preferred_element_type=jnp.float32), 0.0)
    h = jnp.maximum(jnp.dot(h, wh2_ref[...], preferred_element_type=jnp.float32), 0.0)
    # Dominant matmul: bf16 x bf16 operands, f32 accumulation on the MXU; bho folded in (row 64).
    w = jnp.dot(h.astype(jnp.bfloat16), who_ref[...],
                preferred_element_type=jnp.float32)      # (TB, NW_PAD) f32

    # --- main network: out[b,o] = sum_i W[b,o,i]*x[b,i] + bias[b,o], via 2-D MXU matmuls with
    # precomputed 0/1 replicate / group-sum matrices (resident in VMEM; not rebuilt per step).
    a = xc[:, :IN_DIM]
    rep_refs = (rep1_ref, rep2_ref, rep3_ref)
    gs_refs = (gs1_ref, gs2_ref, gs3_ref)
    n_layers = len(MNET_DIMS) - 1
    for li in range(n_layers):
        din, dout = MNET_DIMS[li], MNET_DIMS[li + 1]
        w_flat = w[:, W_OFFS[li]:W_OFFS[li] + dout * din]    # lane-aligned view
        bias = w[:, B_OFFS[li]:B_OFFS[li] + dout]            # lane-aligned view
        a_rep = jnp.dot(a, rep_refs[li][...], preferred_element_type=jnp.float32)
        a = jnp.dot(a_rep * w_flat, gs_refs[li][...],
                    preferred_element_type=jnp.float32) + bias
        if li < n_layers - 1:                                # ReLU between main-net layers only
            a = jnp.maximum(a, 0.0)
    out_ref[...] = a.astype(jnp.float32)


def init_params(key):
    """Deterministic synthetic init of the hypernetwork MLP (ctx -> 64 -> 64 -> NUM_MNET_WEIGHTS),
    stored in the original contiguous [W1, b1, W2, b2, W3, b3] column layout (f32)."""
    dims = (CTX_SIZE,) + HNET_HIDDEN + (NUM_MNET_WEIGHTS,)
    params = []
    for di, do in zip(dims[:-1], dims[1:]):
        key, kw, kb = jax.random.split(key, 3)
        w = jax.random.normal(kw, (di, do), jnp.float32) / np.sqrt(di)
        b = 0.1 * jax.random.normal(kb, (1, do), jnp.float32)
        params += [w, b]
    return params


def prepare_hnet_params(params):
    """One-time (outside the hot path) repack of the hypernet parameters:
      * wh1/bh1 folded into one (8, 128) matrix over [x | ctx | 1 | 0] (zero rows for x),
        plus a 'ones carrier' lane so downstream biases are also matmul-folded;
      * wh2/bh2 folded into (128, 128), carrier passed through;
      * who/bho scattered into the 128-lane-aligned output layout, bho in the carrier row,
        stored in bf16 (bf16 operands, f32 MXU accumulation);
      * the replicate / group-sum 0/1 matrices precomputed once (previously regenerated
        on-chip every grid step)."""
    wh1, bh1, wh2, bh2, who, bho = params
    h1, h2 = HNET_HIDDEN
    carrier = h1                                   # lane carrying the constant 1.0

    wh1_p = np.zeros((XC_DIM, HPAD), np.float32)
    wh1_p[IN_DIM:IN_DIM + CTX_SIZE, :h1] = np.asarray(wh1)
    wh1_p[ONES_COL, :h1] = np.asarray(bh1)[0]
    wh1_p[ONES_COL, carrier] = 1.0                 # create the carrier lane

    wh2_p = np.zeros((HPAD, HPAD), np.float32)
    wh2_p[:h1, :h2] = np.asarray(wh2)
    wh2_p[carrier, :h2] = np.asarray(bh2)[0]
    wh2_p[carrier, h2] = 1.0                       # keep the carrier alive for the output layer

    who_np, bho_np = np.asarray(who), np.asarray(bho)
    who_p = np.zeros((HPAD, NUM_MNET_WEIGHTS_PADDED), np.float32)
    src = 0
    for li, (din, dout) in enumerate(zip(MNET_DIMS[:-1], MNET_DIMS[1:])):
        n_w = din * dout
        who_p[:h2, W_OFFS[li]:W_OFFS[li] + n_w] = who_np[:, src:src + n_w]
        who_p[h2, W_OFFS[li]:W_OFFS[li] + n_w] = bho_np[0, src:src + n_w]
        src += n_w
        who_p[:h2, B_OFFS[li]:B_OFFS[li] + dout] = who_np[:, src:src + dout]
        who_p[h2, B_OFFS[li]:B_OFFS[li] + dout] = bho_np[0, src:src + dout]
        src += dout

    reps = tuple(_replicate_matrix(d, o) for d, o in zip(MNET_DIMS[:-1], MNET_DIMS[1:]))
    gsums = tuple(_group_sum_matrix(d, o) for d, o in zip(MNET_DIMS[:-1], MNET_DIMS[1:]))
    return (jnp.asarray(wh1_p), jnp.asarray(wh2_p),
            jnp.asarray(who_p).astype(jnp.bfloat16)) + reps + gsums


@jax.jit
def hypernetwork_forward(x, context, prepared_params):
    wh1_p, wh2_p, who_p = prepared_params[:3]
    reps = prepared_params[3:3 + len(MNET_DIMS) - 1]
    gsums = prepared_params[3 + len(MNET_DIMS) - 1:]
    B = x.shape[0]

    ones = jnp.ones((B, 1), jnp.float32)
    zeros = jnp.zeros((B, 1), jnp.float32)
    xc = jnp.concatenate([x.astype(jnp.float32), context.astype(jnp.float32), ones, zeros],
                         axis=-1)                                       # (B, 8)

    cfg = _device_config()
    if cfg["split_cores"] and B >= 64:
        # guarantee >= 2 grid steps so the "parallel" batch axis shards across both TCs (v7x)
        tile_b = min(cfg["max_tile_b"], max(8, _round_up((B + 1) // 2, 8)))
    else:
        tile_b = min(cfg["max_tile_b"], _round_up(B, 8))
    grid = (pl.cdiv(B, tile_b),)

    const_arrays = (wh1_p, wh2_p, who_p) + tuple(reps) + tuple(gsums)
    const_specs = [pl.BlockSpec(a.shape, lambda i: (0, 0)) for a in const_arrays]

    # advisory cost estimate (helps XLA schedule around the custom call)
    hnet_flops = 2 * (XC_DIM * HPAD + HPAD * HPAD + HPAD * NUM_MNET_WEIGHTS_PADDED)
    mnet_flops = sum(2 * din * din * dout + din * dout + 2 * din * dout * dout + dout
                     for din, dout in zip(MNET_DIMS[:-1], MNET_DIMS[1:]))
    bytes_accessed = int(xc.size * 4 + B * OUT_DIM * 4
                         + sum(int(a.size) * a.dtype.itemsize for a in const_arrays))

    return pl.pallas_call(
        hypernet_mnet_kernel,
        out_shape=jax.ShapeDtypeStruct((B, OUT_DIM), jnp.float32),
        grid_spec=pltpu.PrefetchScalarGridSpec(
            num_scalar_prefetch=0,
            grid=grid,
            in_specs=[pl.BlockSpec((tile_b, XC_DIM), lambda i: (i, 0))] + const_specs,
            out_specs=pl.BlockSpec((tile_b, OUT_DIM), lambda i: (i, 0)),
        ),
        compiler_params=pltpu.CompilerParams(
            dimension_semantics=("parallel",),          # shard batch tiles across TCs on v7x
            vmem_limit_bytes=cfg["vmem_limit"],
        ),
        cost_estimate=pl.CostEstimate(flops=int(B * (hnet_flops + mnet_flops)),
                                      transcendentals=0,
                                      bytes_accessed=bytes_accessed),
    )(xc, *const_arrays)


def reference_forward(x, context, params):
    """Pure-JAX reference with the original contiguous weight layout.  Applies the same
    mixed-precision policy as the kernel for the dominant hypernet output matmul (bf16
    operands, f32 accumulation); everything else f32, matching the torch module."""
    wh1, bh1, wh2, bh2, who, bho = params
    h = jax.nn.relu(context @ wh1 + bh1)
    h = jax.nn.relu(h @ wh2 + bh2)
    w = jnp.dot(h.astype(jnp.bfloat16), who.astype(jnp.bfloat16),
                preferred_element_type=jnp.float32) + bho
    a = x
    off = 0
    B = x.shape[0]
    n_layers = len(MNET_DIMS) - 1
    for li in range(n_layers):
        din, dout = MNET_DIMS[li], MNET_DIMS[li + 1]
        W = w[:, off:off + dout * din].reshape(B, dout, din)
        off += dout * din
        b = w[:, off:off + dout]
        off += dout
        a = jnp.einsum('boi,bi->bo', W, a) + b
        if li < n_layers - 1:
            a = jax.nn.relu(a)
    return a


if __name__ == "__main__":
    key = jax.random.PRNGKey(0)
    kx, kc, kp = jax.random.split(key, 3)
    params = init_params(kp)
    prepared = prepare_hnet_params(params)

    # default small shapes (B = 8)
    x = jax.random.normal(kx, (BATCH, IN_DIM), jnp.float32)
    context = jax.random.normal(kc, (BATCH, CTX_SIZE), jnp.float32)
    out = jax.block_until_ready(hypernetwork_forward(x, context, prepared))
    assert out.shape == (BATCH, OUT_DIM)
    ref = reference_forward(x, context, params)
    np.testing.assert_allclose(np.asarray(out), np.asarray(ref), rtol=5e-2, atol=5e-2)

    # larger batch: exercises multiple grid steps / partial last tile
    kx2, kc2 = jax.random.split(kx)
    B2 = 300
    x2 = jax.random.normal(kx2, (B2, IN_DIM), jnp.float32)
    context2 = jax.random.normal(kc2, (B2, CTX_SIZE), jnp.float32)
    out2 = jax.block_until_ready(hypernetwork_forward(x2, context2, prepared))
    ref2 = reference_forward(x2, context2, params)
    np.testing.assert_allclose(np.asarray(out2), np.asarray(ref2), rtol=5e-2, atol=5e-2)

    print("KERNEL_OK")
</pallas_src>

<mosaic_0001>
module attributes {stable_mosaic.version = 11 : i64} {
  func.func @hypernet_mnet_kernel(%arg0: i32, %arg1: memref<8x8xf32, #tpu.memory_space<vmem>>, %arg2: memref<8x128xf32, #tpu.memory_space<vmem>>, %arg3: memref<128x128xf32, #tpu.memory_space<vmem>>, %arg4: memref<128x1664xbf16, #tpu.memory_space<vmem>>, %arg5: memref<4x128xf32, #tpu.memory_space<vmem>>, %arg6: memref<32x1024xf32, #tpu.memory_space<vmem>>, %arg7: memref<32x96xf32, #tpu.memory_space<vmem>>, %arg8: memref<128x32xf32, #tpu.memory_space<vmem>>, %arg9: memref<1024x32xf32, #tpu.memory_space<vmem>>, %arg10: memref<96x3xf32, #tpu.memory_space<vmem>>, %arg11: memref<8x3xf32, #tpu.memory_space<vmem>>) attributes {dimension_semantics = [#tpu.dimension_semantics<parallel>], iteration_bounds = array<i64: 1>, scalar_prefetch = 0 : i64, scratch_operands = 0 : i64, tpu.core_type = #tpu.core_type<tc>, window_params = [{transform_indices = @transform_0, window_bounds = array<i64: 8, 8>}, {pipeline_mode = #tpu.pipeline_mode<synchronous>, transform_indices = @transform_1, window_bounds = array<i64: 8, 128>}, {pipeline_mode = #tpu.pipeline_mode<synchronous>, transform_indices = @transform_2, window_bounds = array<i64: 128, 128>}, {pipeline_mode = #tpu.pipeline_mode<synchronous>, transform_indices = @transform_3, window_bounds = array<i64: 128, 1664>}, {pipeline_mode = #tpu.pipeline_mode<synchronous>, transform_indices = @transform_4, window_bounds = array<i64: 4, 128>}, {pipeline_mode = #tpu.pipeline_mode<synchronous>, transform_indices = @transform_5, window_bounds = array<i64: 32, 1024>}, {pipeline_mode = #tpu.pipeline_mode<synchronous>, transform_indices = @transform_6, window_bounds = array<i64: 32, 96>}, {pipeline_mode = #tpu.pipeline_mode<synchronous>, transform_indices = @transform_7, window_bounds = array<i64: 128, 32>}, {pipeline_mode = #tpu.pipeline_mode<synchronous>, transform_indices = @transform_8, window_bounds = array<i64: 1024, 32>}, {pipeline_mode = #tpu.pipeline_mode<synchronous>, transform_indices = @transform_9, window_bounds = array<i64: 96, 3>}, {transform_indices = @transform_10, window_bounds = array<i64: 8, 3>}]} {
    %c0 = arith.constant 0 : index
    %c0_0 = arith.constant 0 : index
    %0 = vector.load %arg1[%c0, %c0_0] : memref<8x8xf32, #tpu.memory_space<vmem>>, vector<8x8xf32>
    %c0_1 = arith.constant 0 : index
    %c0_2 = arith.constant 0 : index
    %1 = vector.load %arg2[%c0_1, %c0_2] : memref<8x128xf32, #tpu.memory_space<vmem>>, vector<8x128xf32>
    %cst = arith.constant dense<0.000000e+00> : vector<8x128xf32>
    %2 = tpu.matmul %0, %1, %cst {dimension_numbers = #tpu.dot_dimension_numbers<[1], [0], [0], [1], [0, 0, 1, 1], [], []>} : vector<8x8xf32>, vector<8x128xf32>, vector<8x128xf32> -> vector<8x128xf32>
    %cst_3 = arith.constant 0.000000e+00 : f32
    %3 = vector.broadcast %cst_3 : f32 to vector<8x128xf32>
    %4 = arith.maximumf %2, %3 : vector<8x128xf32>
    %c0_4 = arith.constant 0 : index
    %c0_5 = arith.constant 0 : index
    %5 = vector.load %arg3[%c0_4, %c0_5] : memref<128x128xf32, #tpu.memory_space<vmem>>, vector<128x128xf32>
    %cst_6 = arith.constant dense<0.000000e+00> : vector<8x128xf32>
    %6 = tpu.matmul %4, %5, %cst_6 {dimension_numbers = #tpu.dot_dimension_numbers<[1], [0], [0], [1], [0, 0, 1, 1], [], []>} : vector<8x128xf32>, vector<128x128xf32>, vector<8x128xf32> -> vector<8x128xf32>
    %cst_7 = arith.constant 0.000000e+00 : f32
    %7 = vector.broadcast %cst_7 : f32 to vector<8x128xf32>
    %8 = arith.maximumf %6, %7 : vector<8x128xf32>
    %9 = arith.truncf %8 : vector<8x128xf32> to vector<8x128xbf16>
    %c0_8 = arith.constant 0 : index
    %c0_9 = arith.constant 0 : index
    %10 = vector.load %arg4[%c0_8, %c0_9] : memref<128x1664xbf16, #tpu.memory_space<vmem>>, vector<128x1664xbf16>
    %cst_10 = arith.constant dense<0.000000e+00> : vector<8x1664xf32>
    %11 = tpu.matmul %9, %10, %cst_10 {dimension_numbers = #tpu.dot_dimension_numbers<[1], [0], [0], [1], [0, 0, 1, 1], [], []>} : vector<8x128xbf16>, vector<128x1664xbf16>, vector<8x1664xf32> -> vector<8x1664xf32>
    %12 = vector.extract_strided_slice %0 {offsets = [0, 0], sizes = [8, 4], strides = [1, 1]} : vector<8x8xf32> to vector<8x4xf32>
    %13 = vector.extract_strided_slice %11 {offsets = [0, 0], sizes = [8, 128], strides = [1, 1]} : vector<8x1664xf32> to vector<8x128xf32>
    %14 = vector.extract_strided_slice %11 {offsets = [0, 128], sizes = [8, 32], strides = [1, 1]} : vector<8x1664xf32> to vector<8x32xf32>
    %c0_11 = arith.constant 0 : index
    %c0_12 = arith.constant 0 : index
    %15 = vector.load %arg5[%c0_11, %c0_12] : memref<4x128xf32, #tpu.memory_space<vmem>>, vector<4x128xf32>
    %cst_13 = arith.constant dense<0.000000e+00> : vector<8x128xf32>
    %16 = tpu.matmul %12, %15, %cst_13 {dimension_numbers = #tpu.dot_dimension_numbers<[1], [0], [0], [1], [0, 0, 1, 1], [], []>} : vector<8x4xf32>, vector<4x128xf32>, vector<8x128xf32> -> vector<8x128xf32>
    %17 = arith.mulf %16, %13 : vector<8x128xf32>
    %c0_14 = arith.constant 0 : index
    %c0_15 = arith.constant 0 : index
    %18 = vector.load %arg8[%c0_14, %c0_15] : memref<128x32xf32, #tpu.memory_space<vmem>>, vector<128x32xf32>
    %cst_16 = arith.constant dense<0.000000e+00> : vector<8x32xf32>
    %19 = tpu.matmul %17, %18, %cst_16 {dimension_numbers = #tpu.dot_dimension_numbers<[1], [0], [0], [1], [0, 0, 1, 1], [], []>} : vector<8x128xf32>, vector<128x32xf32>, vector<8x32xf32> -> vector<8x32xf32>
    %20 = arith.addf %19, %14 : vector<8x32xf32>
    %cst_17 = arith.constant 0.000000e+00 : f32
    %21 = vector.broadcast %cst_17 : f32 to vector<8x32xf32>
    %22 = arith.maximumf %20, %21 : vector<8x32xf32>
    %23 = vector.extract_strided_slice %11 {offsets = [0, 256], sizes = [8, 1024], strides = [1, 1]} : vector<8x1664xf32> to vector<8x1024xf32>
    %24 = vector.extract_strided_slice %11 {offsets = [0, 1280], sizes = [8, 32], strides = [1, 1]} : vector<8x1664xf32> to vector<8x32xf32>
    %c0_18 = arith.constant 0 : index
    %c0_19 = arith.constant 0 : index
    %25 = vector.load %arg6[%c0_18, %c0_19] : memref<32x1024xf32, #tpu.memory_space<vmem>>, vector<32x1024xf32>
    %cst_20 = arith.constant dense<0.000000e+00> : vector<8x1024xf32>
    %26 = tpu.matmul %22, %25, %cst_20 {dimension_numbers = #tpu.dot_dimension_numbers<[1], [0], [0], [1], [0, 0, 1, 1], [], []>} : vector<8x32xf32>, vector<32x1024xf32>, vector<8x1024xf32> -> vector<8x1024xf32>
    %27 = arith.mulf %26, %23 : vector<8x1024xf32>
    %c0_21 = arith.constant 0 : index
    %c0_22 = arith.constant 0 : index
    %28 = vector.load %arg9[%c0_21, %c0_22] : memref<1024x32xf32, #tpu.memory_space<vmem>>, vector<1024x32xf32>
    %cst_23 = arith.constant dense<0.000000e+00> : vector<8x32xf32>
    %29 = tpu.matmul %27, %28, %cst_23 {dimension_numbers = #tpu.dot_dimension_numbers<[1], [0], [0], [1], [0, 0, 1, 1], [], []>} : vector<8x1024xf32>, vector<1024x32xf32>, vector<8x32xf32> -> vector<8x32xf32>
    %30 = arith.addf %29, %24 : vector<8x32xf32>
    %cst_24 = arith.constant 0.000000e+00 : f32
    %31 = vector.broadcast %cst_24 : f32 to vector<8x32xf32>
    %32 = arith.maximumf %30, %31 : vector<8x32xf32>
    %33 = vector.extract_strided_slice %11 {offsets = [0, 1408], sizes = [8, 96], strides = [1, 1]} : vector<8x1664xf32> to vector<8x96xf32>
    %34 = vector.extract_strided_slice %11 {offsets = [0, 1536], sizes = [8, 3], strides = [1, 1]} : vector<8x1664xf32> to vector<8x3xf32>
    %c0_25 = arith.constant 0 : index
    %c0_26 = arith.constant 0 : index
    %35 = vector.load %arg7[%c0_25, %c0_26] : memref<32x96xf32, #tpu.memory_space<vmem>>, vector<32x96xf32>
    %cst_27 = arith.constant dense<0.000000e+00> : vector<8x96xf32>
    %36 = tpu.matmul %32, %35, %cst_27 {dimension_numbers = #tpu.dot_dimension_numbers<[1], [0], [0], [1], [0, 0, 1, 1], [], []>} : vector<8x32xf32>, vector<32x96xf32>, vector<8x96xf32> -> vector<8x96xf32>
    %37 = arith.mulf %36, %33 : vector<8x96xf32>
    %c0_28 = arith.constant 0 : index
    %c0_29 = arith.constant 0 : index
    %38 = vector.load %arg10[%c0_28, %c0_29] : memref<96x3xf32, #tpu.memory_space<vmem>>, vector<96x3xf32>
    %cst_30 = arith.constant dense<0.000000e+00> : vector<8x3xf32>
    %39 = tpu.matmul %37, %38, %cst_30 {dimension_numbers = #tpu.dot_dimension_numbers<[1], [0], [0], [1], [0, 0, 1, 1], [], []>} : vector<8x96xf32>, vector<96x3xf32>, vector<8x3xf32> -> vector<8x3xf32>
    %40 = arith.addf %39, %34 : vector<8x3xf32>
    %c0_31 = arith.constant 0 : index
    %c0_32 = arith.constant 0 : index
    %41 = vector.load %arg11[%c0_31, %c0_32] : memref<8x3xf32, #tpu.memory_space<vmem>>, vector<8x3xf32>
    tpu.vector_store %arg11[%c0_31, %c0_32], %40 {strides = array<i32>} : memref<8x3xf32, #tpu.memory_space<vmem>>, vector<8x3xf32>,
    return
  }
  func.func @transform_0(%arg0: i32) -> (i32, i32) {
    %c0_i32 = arith.constant 0 : i32
    %c0_i32_0 = arith.constant 0 : i32
    return %arg0, %c0_i32 : i32, i32
  }
  func.func @transform_1(%arg0: i32) -> (i32, i32) {
    %c0_i32 = arith.constant 0 : i32
    %c0_i32_0 = arith.constant 0 : i32
    %c0_i32_1 = arith.constant 0 : i32
    return %c0_i32, %c0_i32_0 : i32, i32
  }
  func.func @transform_2(%arg0: i32) -> (i32, i32) {
    %c0_i32 = arith.constant 0 : i32
    %c0_i32_0 = arith.constant 0 : i32
    %c0_i32_1 = arith.constant 0 : i32
    return %c0_i32, %c0_i32_0 : i32, i32
  }
  func.func @transform_3(%arg0: i32) -> (i32, i32) {
    %c0_i32 = arith.constant 0 : i32
    %c0_i32_0 = arith.constant 0 : i32
    %c0_i32_1 = arith.constant 0 : i32
    return %c0_i32, %c0_i32_0 : i32, i32
  }
  func.func @transform_4(%arg0: i32) -> (i32, i32) {
    %c0_i32 = arith.constant 0 : i32
    %c0_i32_0 = arith.constant 0 : i32
    %c0_i32_1 = arith.constant 0 : i32
    return %c0_i32, %c0_i32_0 : i32, i32
  }
  func.func @transform_5(%arg0: i32) -> (i32, i32) {
    %c0_i32 = arith.constant 0 : i32
    %c0_i32_0 = arith.constant 0 : i32
    %c0_i32_1 = arith.constant 0 : i32
    return %c0_i32, %c0_i32_0 : i32, i32
  }
  func.func @transform_6(%arg0: i32) -> (i32, i32) {
    %c0_i32 = arith.constant 0 : i32
    %c0_i32_0 = arith.constant 0 : i32
    %c0_i32_1 = arith.constant 0 : i32
    return %c0_i32, %c0_i32_0 : i32, i32
  }
  func.func @transform_7(%arg0: i32) -> (i32, i32) {
    %c0_i32 = arith.constant 0 : i32
    %c0_i32_0 = arith.constant 0 : i32
    %c0_i32_1 = arith.constant 0 : i32
    return %c0_i32, %c0_i32_0 : i32, i32
  }
  func.func @transform_8(%arg0: i32) -> (i32, i32) {
    %c0_i32 = arith.constant 0 : i32
    %c0_i32_0 = arith.constant 0 : i32
    %c0_i32_1 = arith.constant 0 : i32
    return %c0_i32, %c0_i32_0 : i32, i32
  }
  func.func @transform_9(%arg0: i32) -> (i32, i32) {
    %c0_i32 = arith.constant 0 : i32
    %c0_i32_0 = arith.constant 0 : i32
    %c0_i32_1 = arith.constant 0 : i32
    return %c0_i32, %c0_i32_0 : i32, i32
  }
  func.func @transform_10(%arg0: i32) -> (i32, i32) {
    %c0_i32 = arith.constant 0 : i32
    %c0_i32_0 = arith.constant 0 : i32
    return %arg0, %c0_i32 : i32, i32
  }
}

</mosaic_0001>

<bundles_post_ra>
// kernel: hypernetwork_forward.1
= control target key start
LH: loop header
LB: loop body
LE: loop exit
PB: predicated region body
PF: predicated region fallthrough
CT: control target
= control target key end

     0   :  { %vm38_vm0 = vcmask 64512   ;;  %v2811_v0 = vmov 0.0   ;;  %vm2812_vm1 = vmmov 0   ;;  %v2813_v56 = vmov 0   ;;  %s3959_s1 = inlined_call_operand.vmem [shape: f32[8,128], index: 1, kind: input, shape index: {}]   ;;  %s3960_s0 = inlined_call_operand.vmem [shape: f32[8,8], index: 0, kind: input, shape index: {}]   ;;  %s3961_s2 = inlined_call_operand.vmem [shape: f32[128,128], index: 2, kind: input, shape index: {}]   ;;  %s3962_s3 = inlined_call_operand.vmem [shape: bf16[128,1664], index: 3, kind: input, shape index: {}]   ;;  %s3963_s4 = inlined_call_operand.vmem [shape: f32[4,128], index: 4, kind: input, shape index: {}]   ;;  %s3964_s7 = inlined_call_operand.vmem [shape: f32[128,32], index: 7, kind: input, shape index: {}]   ;;  %s3965_s5 = inlined_call_operand.vmem [shape: f32[32,1024], index: 5, kind: input, shape index: {}]   ;;  %s3966_s8 = inlined_call_operand.vmem [shape: f32[1024,32], index: 8, kind: input, shape index: {}]   ;;  %s3967_s6 = inlined_call_operand.vmem [shape: f32[32,96], index: 6, kind: input, shape index: {}]   ;;  %s3968_s9 = inlined_call_operand.vmem [shape: f32[96,3], index: 9, kind: input, shape index: {}]   ;;  %s3969_s10 = inlined_call_operand.vmem [shape: f32[8,3], index: 10, kind: output, shape index: {}]  }
   0x1   :  { %2518 = vmatprep.subr.mxu0 %v2811_v0  ;;  %v37_v1 = vld [vmem:[%s3959_s1] sm:$0xff]  ;;  %2520 = vmatprep.mubr.msk.f32.mxu0 %vm2812_vm1, %v2811_v0  ;;  %v128_v3 = vld [vmem:[%s3961_s2 + $0x78] sm:$0xff]  ;;  %v127_v4 = vld [vmem:[%s3961_s2 + $0x70] sm:$0xff]  ;;  %vm1131_vm2 = vcmask 1043456   ;;  %vm1128_vm3 = vcmask 31744   ;;  %vm1325_vm4 = vcmask 261120  }
   0x2   :  { %v2878_v2 = vld [vmem:[%s3960_s0] sm:$0xff]  ;;  %2519 = vmatpush3.msra.mxu0 %v37_v1  ;;  %2523 = vmatprep.subr.mxu1 %v2811_v0  ;;  %v126_v5 = vld [vmem:[%s3961_s2 + $0x68] sm:$0xff]  ;;  %v124_v7 = vld [vmem:[%s3961_s2 + $0x58] sm:$0xff]  ;;  %vm2120_vm5 = vcmask 785408   ;;  %vm2194_vm6 = vcmask 23552  }
   0x3   :  { %2521 = vmatmul.mubr.msk.f32.vlgmr.msra.gmra.mxu0 %vm38_vm0, %v2878_v2  ;;  %2524 = vmatpush3.msra.mxu1 %v128_v3  ;;  %v125_v6 = vld [vmem:[%s3961_s2 + $0x60] sm:$0xff]  ;;  %v123_v8 = vld [vmem:[%s3961_s2 + $0x50] sm:$0xff]  ;;  %v122_v9 = vld [vmem:[%s3961_s2 + $0x48] sm:$0xff] }
   0x4   :  { %2525 = vmatprep.subr.mxu1 %v2811_v0  ;;  %2555 = vmatprep.mubr.msk.f32.mxu1 %vm2812_vm1, %v2811_v0  ;;  %v121_v10 = vld [vmem:[%s3961_s2 + $0x40] sm:$0xff]  ;;  %v120_v11 = vld [vmem:[%s3961_s2 + $0x38] sm:$0xff]  ;;  %v119_v12 = vld [vmem:[%s3961_s2 + $0x30] sm:$0xff] }
   0x5   :  { %2526 = vmatpush3.msra.mxu1 %v127_v4  ;;  %v118_v13 = vld [vmem:[%s3961_s2 + $0x28] sm:$0xff]  ;;  %v117_v14 = vld [vmem:[%s3961_s2 + $0x20] sm:$0xff]  ;;  %v116_v15 = vld [vmem:[%s3961_s2 + $0x18] sm:$0xff]  ;;  %873 = vmatprep.mubr.bf16.mxu0 %v2813_v56 }
   0x6   :  { %2527 = vmatprep.subr.mxu1 %v2811_v0  ;;  %v115_v16 = vld [vmem:[%s3961_s2 + $0x10] sm:$0xff]  ;;  %v114_v17 = vld [vmem:[%s3961_s2 + $0x8] sm:$0xff]  ;;  %v113_v18 = vld [vmem:[%s3961_s2] sm:$0xff] }
   0x7   :  { %2528 = vmatpush3.msra.mxu1 %v126_v5  ;;  %v2659_v19 = vld [vmem:[%s3962_s3 + $0x2d8] ss:$52 sps:$4 sm:$0xff]   ;;  %v2661_v20 = vld [vmem:[%s3962_s3 + $0x2dc] ss:$52 sps:$4 sm:$0xff]   ;;  %v2667_v22 = vld [vmem:[%s3962_s3 + $0x274] ss:$52 sps:$4 sm:$0xff]  }
   0x8   :  { %2529 = vmatprep.subr.mxu1 %v2811_v0  ;;  %v2664_v21 = vld [vmem:[%s3962_s3 + $0x2e4] ss:$52 sps:$4 sm:$0xff]   ;;  %841 = vmatprep.subr.bf16.mxu0 %v2661_v20  ;;  %v2673_v24 = vld [vmem:[%s3962_s3 + $0x20c] ss:$52 sps:$4 sm:$0xff]   ;;  %v2671_v25 = vld [vmem:[%s3962_s3 + $0x208] ss:$52 sps:$4 sm:$0xff]  }
   0x9   :  { %2530 = vmatpush3.msra.mxu1 %v125_v6  ;;  %842 = vmatpush1.bf16.msra.mxu0 %v2659_v19  ;;  %v2665_v23 = vld [vmem:[%s3962_s3 + $0x270] ss:$52 sps:$4 sm:$0xff]   ;;  %v2677_v27 = vld [vmem:[%s3962_s3 + $0x1a0] ss:$52 sps:$4 sm:$0xff]   ;;  %v2683_v29 = vld [vmem:[%s3962_s3 + $0x138] ss:$52 sps:$4 sm:$0xff]  }
   0xa   :  { %2531 = vmatprep.subr.mxu1 %v2811_v0  ;;  %843 = vmatprep.subr.bf16.mxu0 %v2667_v22  ;;  %v2679_v26 = vld [vmem:[%s3962_s3 + $0x1a4] ss:$52 sps:$4 sm:$0xff]   ;;  %v2685_v28 = vld [vmem:[%s3962_s3 + $0x13c] ss:$52 sps:$4 sm:$0xff]   ;;  %v2691_v30 = vld [vmem:[%s3962_s3 + $0xd4] ss:$52 sps:$4 sm:$0xff]  }
   0xb   :  { %2532 = vmatpush3.msra.mxu1 %v124_v7  ;;  %v2689_v31 = vld [vmem:[%s3962_s3 + $0xd0] ss:$52 sps:$4 sm:$0xff]   ;;  %v2697_v32 = vld [vmem:[%s3962_s3 + $0x6c] ss:$52 sps:$4 sm:$0xff]   ;;  %v2695_v33 = vld [vmem:[%s3962_s3 + $0x68] ss:$52 sps:$4 sm:$0xff]  }
   0xc   :  { %2533 = vmatprep.subr.mxu1 %v2811_v0  ;;  %v2662_v35 = vld [vmem:[%s3962_s3 + $0x2e0] ss:$52 sps:$4 sm:$0xff]   ;;  %v2670_v37 = vld [vmem:[%s3962_s3 + $0x27c] ss:$52 sps:$4 sm:$0xff]   ;;  %v2668_v39 = vld [vmem:[%s3962_s3 + $0x278] ss:$52 sps:$4 sm:$0xff]  }
   0xd   :  { %2534 = vmatpush3.msra.mxu1 %v123_v8  ;;  %844 = vmatpush1.bf16.msra.mxu0 %v2665_v23  ;;  %v2676_v40 = vld [vmem:[%s3962_s3 + $0x214] ss:$52 sps:$4 sm:$0xff]   ;;  %v2674_v41 = vld [vmem:[%s3962_s3 + $0x210] ss:$52 sps:$4 sm:$0xff]   ;;  %v2682_v42 = vld [vmem:[%s3962_s3 + $0x1ac] ss:$52 sps:$4 sm:$0xff]  }
   0xe   :  { %2535 = vmatprep.subr.mxu1 %v2811_v0  ;;  %845 = vmatprep.subr.bf16.mxu0 %v2673_v24  ;;  %v2680_v43 = vld [vmem:[%s3962_s3 + $0x1a8] ss:$52 sps:$4 sm:$0xff]   ;;  %v2688_v44 = vld [vmem:[%s3962_s3 + $0x144] ss:$52 sps:$4 sm:$0xff]   ;;  %v2686_v45 = vld [vmem:[%s3962_s3 + $0x140] ss:$52 sps:$4 sm:$0xff]  }
   0xf   :  { %2536 = vmatpush3.msra.mxu1 %v122_v9  ;;  %v2694_v46 = vld [vmem:[%s3962_s3 + $0xdc] ss:$52 sps:$4 sm:$0xff]   ;;  %v2692_v47 = vld [vmem:[%s3962_s3 + $0xd8] ss:$52 sps:$4 sm:$0xff]   ;;  %v2700_v48 = vld [vmem:[%s3962_s3 + $0x74] ss:$52 sps:$4 sm:$0xff]  }
  0x10   :  { %2537 = vmatprep.subr.mxu1 %v2811_v0  ;;  %v2698_v49 = vld [vmem:[%s3962_s3 + $0x70] ss:$52 sps:$4 sm:$0xff]   ;;  %v2706_v51 = vld [vmem:[%s3962_s3 + $0xc] ss:$52 sps:$4 sm:$0xff]   ;;  %v2704_v53 = vld [vmem:[%s3962_s3 + $0x8] ss:$52 sps:$4 sm:$0xff]  }
  0x11   :  { %2538 = vmatpush3.msra.mxu1 %v121_v10  ;;  %846 = vmatpush1.bf16.msra.mxu0 %v2671_v25  ;;  %v2703_v50 = vld [vmem:[%s3962_s3 + $0x4] ss:$52 sps:$4 sm:$0xff]   ;;  %v2701_v52 = vld [vmem:[%s3962_s3] ss:$52 sps:$4 sm:$0xff]   ;;  %v2707_v60 = vld [vmem:[%s3962_s3 + $0x2e8] ss:$52 sps:$4 sm:$0xff]  }
  0x12   :  { %2539 = vmatprep.subr.mxu1 %v2811_v0  ;;  %847 = vmatprep.subr.bf16.mxu0 %v2679_v26  ;;  %v2709_v54 = vld [vmem:[%s3962_s3 + $0x2ec] ss:$52 sps:$4 sm:$0xff]   ;;  %v2712_v55 = vld [vmem:[%s3962_s3 + $0x2f4] ss:$52 sps:$4 sm:$0xff]   ;;  %v2710_v61 = vld [vmem:[%s3962_s3 + $0x2f0] ss:$52 sps:$4 sm:$0xff]  }
  0x13   :  { %2540 = vmatpush3.msra.mxu1 %v120_v11  ;;  %v2715_v63 = vld [vmem:[%s3962_s3 + $0x284] ss:$52 sps:$4 sm:$0xff]   ;;  %v2718_v1 = vld [vmem:[%s3962_s3 + $0x28c] ss:$52 sps:$4 sm:$0xff]   ;;  %v2716_v4 = vld [vmem:[%s3962_s3 + $0x288] ss:$52 sps:$4 sm:$0xff]  }
  0x14   :  { %2541 = vmatprep.subr.mxu1 %v2811_v0  ;;  %v2713_v3 = vld [vmem:[%s3962_s3 + $0x280] ss:$52 sps:$4 sm:$0xff]   ;;  %v2721_v5 = vld [vmem:[%s3962_s3 + $0x21c] ss:$52 sps:$4 sm:$0xff]   ;;  %v2724_v6 = vld [vmem:[%s3962_s3 + $0x224] ss:$52 sps:$4 sm:$0xff]  }
  0x15   :  { %2542 = vmatpush3.msra.mxu1 %v119_v12  ;;  %848 = vmatpush1.bf16.msra.mxu0 %v2677_v27  ;;  %v2719_v7 = vld [vmem:[%s3962_s3 + $0x218] ss:$52 sps:$4 sm:$0xff]   ;;  %v2722_v8 = vld [vmem:[%s3962_s3 + $0x220] ss:$52 sps:$4 sm:$0xff]   ;;  %v2730_v10 = vld [vmem:[%s3962_s3 + $0x1bc] ss:$52 sps:$4 sm:$0xff]  }
  0x16   :  { %2543 = vmatprep.subr.mxu1 %v2811_v0  ;;  %849 = vmatprep.subr.bf16.mxu0 %v2685_v28  ;;  %v2727_v9 = vld [vmem:[%s3962_s3 + $0x1b4] ss:$52 sps:$4 sm:$0xff]   ;;  %v2725_v11 = vld [vmem:[%s3962_s3 + $0x1b0] ss:$52 sps:$4 sm:$0xff]   ;;  %v2728_v12 = vld [vmem:[%s3962_s3 + $0x1b8] ss:$52 sps:$4 sm:$0xff]  }
  0x17   :  { %2544 = vmatpush3.msra.mxu1 %v118_v13  ;;  %v2733_v13 = vld [vmem:[%s3962_s3 + $0x14c] ss:$52 sps:$4 sm:$0xff]   ;;  %v2740_v20 = vld [vmem:[%s3962_s3 + $0xe8] ss:$52 sps:$4 sm:$0xff]   ;;  %v2748_v22 = vld [vmem:[%s3962_s3 + $0x84] ss:$52 sps:$4 sm:$0xff]  }
  0x18   :  { %2545 = vmatprep.subr.mxu1 %v2811_v0  ;;  %v2737_v19 = vld [vmem:[%s3962_s3 + $0xe0] ss:$52 sps:$4 sm:$0xff]   ;;  %v2743_v23 = vld [vmem:[%s3962_s3 + $0x78] ss:$52 sps:$4 sm:$0xff]   ;;  %v2754_v26 = vld [vmem:[%s3962_s3 + $0x1c] ss:$52 sps:$4 sm:$0xff]  }
  0x19   :  { %2546 = vmatpush3.msra.mxu1 %v117_v14  ;;  %850 = vmatpush1.bf16.msra.mxu0 %v2683_v29  ;;  %v2736_v14 = vld [vmem:[%s3962_s3 + $0x154] ss:$52 sps:$4 sm:$0xff]   ;;  %v2749_v27 = vld [vmem:[%s3962_s3 + $0x10] ss:$52 sps:$4 sm:$0xff]   ;;  %v2752_v28 = vld [vmem:[%s3962_s3 + $0x18] ss:$52 sps:$4 sm:$0xff]  }
  0x1a   :  { %2547 = vmatprep.subr.mxu1 %v2811_v0  ;;  %851 = vmatprep.subr.bf16.mxu0 %v2691_v30  ;;  %v2746_v24 = vld [vmem:[%s3962_s3 + $0x80] ss:$52 sps:$4 sm:$0xff]   ;;  %v2757_v29 = vld [vmem:[%s3962_s3 + $0x2fc] ss:$52 sps:$4 sm:$0xff]   ;;  %v2760_v30 = vld [vmem:[%s3962_s3 + $0x304] ss:$52 sps:$4 sm:$0xff]  }
  0x1b   :  { %2548 = vmatpush3.msra.mxu1 %v116_v15  ;;  %v2731_v15 = vld [vmem:[%s3962_s3 + $0x148] ss:$52 sps:$4 sm:$0xff]  }
  0x1c   :  { %2549 = vmatprep.subr.mxu1 %v2811_v0  ;;  %v2751_v25 = vld [vmem:[%s3962_s3 + $0x14] ss:$52 sps:$4 sm:$0xff]  }
  0x1d   :  { %2550 = vmatpush3.msra.mxu1 %v115_v16  ;;  %852 = vmatpush1.bf16.msra.mxu0 %v2689_v31  ;;  %v2734_v16 = vld [vmem:[%s3962_s3 + $0x150] ss:$52 sps:$4 sm:$0xff]   ;;  %v2755_v31 = vld [vmem:[%s3962_s3 + $0x2f8] ss:$52 sps:$4 sm:$0xff]  }
  0x1e   :  { %2551 = vmatprep.subr.mxu1 %v2811_v0  ;;  %853 = vmatprep.subr.bf16.mxu0 %v2697_v32  ;;  %v2758_v32 = vld [vmem:[%s3962_s3 + $0x300] ss:$52 sps:$4 sm:$0xff]  }
  0x1f   :  { %2552 = vmatpush3.msra.mxu1 %v114_v17  ;;  %v2739_v17 = vld [vmem:[%s3962_s3 + $0xe4] ss:$52 sps:$4 sm:$0xff]  }
  0x20   :  { %2553 = vmatprep.subr.mxu1 %v2811_v0 }
  0x21   :  { %2554 = vmatpush3.msra.mxu1 %v113_v18  ;;  %854 = vmatpush1.bf16.msra.mxu0 %v2695_v33  ;;  %v2742_v18 = vld [vmem:[%s3962_s3 + $0xec] ss:$52 sps:$4 sm:$0xff]   ;;  %v2763_v33 = vld [vmem:[%s3962_s3 + $0x294] ss:$52 sps:$4 sm:$0xff]  }
  0x22   :  { %882 = vmatprep.subr.bf16.mxu1 %v2664_v21  ;;  %855 = vmatprep.subr.bf16.mxu0 %v2703_v50  ;;  %v2745_v21 = vld [vmem:[%s3962_s3 + $0x7c] ss:$52 sps:$4 sm:$0xff]  }
  0x23   :  { %v2790_v50 = vld [vmem:[%s3962_s3 + $0xfc] ss:$52 sps:$4 sm:$0xff]  }
  0x25   :  { %856 = vmatpush1.bf16.msra.mxu0 %v2701_v52  ;;  %v2788_v52 = vld [vmem:[%s3962_s3 + $0xf8] ss:$52 sps:$4 sm:$0xff]  }
  0x26   :  { %923 = vmatprep.subr.bf16.mxu0 %v2709_v54  ;;  %v2796_v54 = vld [vmem:[%s3962_s3 + $0x94] ss:$52 sps:$4 sm:$0xff]  }
  0xc3   :  { %v108_v34 = vpop.f32.mrf.mxu0 }
  0xc4   :  { %v112_v36 = vmax.f32 %v108_v34, 0.0  ;;  %v2766_v34 = vld [vmem:[%s3962_s3 + $0x29c] ss:$52 sps:$4 sm:$0xff]  }
  0xc5   :  { %v2522_v38 = vpop.f32.mrf.mxu0 }
  0xc6   :  { %2556 = vmatmul.mubr.f32.vlgmr.msra.gmra.mxu1 %v112_v36  ;;  %v2764_v36 = vld [vmem:[%s3962_s3 + $0x298] ss:$52 sps:$4 sm:$0xff]   ;;  %v2772_v38 = vld [vmem:[%s3962_s3 + $0x234] ss:$52 sps:$4 sm:$0xff]  }
  0xc7   :  { %883 = vmatpush1.bf16.msra.mxu1 %v2662_v35  ;;  %914 = vmatprep.mubr.bf16.mxu1 %v2813_v56  ;;  %v2761_v35 = vld [vmem:[%s3962_s3 + $0x290] ss:$52 sps:$4 sm:$0xff]  }
  0xc8   :  { %884 = vmatprep.subr.bf16.mxu1 %v2670_v37  ;;  %v2769_v37 = vld [vmem:[%s3962_s3 + $0x22c] ss:$52 sps:$4 sm:$0xff]  }
  0xcb   :  { %885 = vmatpush1.bf16.msra.mxu1 %v2668_v39  ;;  %v2767_v39 = vld [vmem:[%s3962_s3 + $0x228] ss:$52 sps:$4 sm:$0xff]  }
  0xcc   :  { %886 = vmatprep.subr.bf16.mxu1 %v2676_v40  ;;  %v2770_v40 = vld [vmem:[%s3962_s3 + $0x230] ss:$52 sps:$4 sm:$0xff]  }
  0xcf   :  { %887 = vmatpush1.bf16.msra.mxu1 %v2674_v41  ;;  %v2775_v41 = vld [vmem:[%s3962_s3 + $0x1c4] ss:$52 sps:$4 sm:$0xff]  }
  0xd0   :  { %888 = vmatprep.subr.bf16.mxu1 %v2682_v42  ;;  %v2778_v42 = vld [vmem:[%s3962_s3 + $0x1cc] ss:$52 sps:$4 sm:$0xff]  }
  0xd3   :  { %889 = vmatpush1.bf16.msra.mxu1 %v2680_v43  ;;  %v2773_v43 = vld [vmem:[%s3962_s3 + $0x1c0] ss:$52 sps:$4 sm:$0xff]  }
  0xd4   :  { %890 = vmatprep.subr.bf16.mxu1 %v2688_v44  ;;  %v2776_v44 = vld [vmem:[%s3962_s3 + $0x1c8] ss:$52 sps:$4 sm:$0xff]  }
  0xd7   :  { %891 = vmatpush1.bf16.msra.mxu1 %v2686_v45  ;;  %v2781_v45 = vld [vmem:[%s3962_s3 + $0x15c] ss:$52 sps:$4 sm:$0xff]  }
  0xd8   :  { %892 = vmatprep.subr.bf16.mxu1 %v2694_v46  ;;  %v2784_v46 = vld [vmem:[%s3962_s3 + $0x164] ss:$52 sps:$4 sm:$0xff]  }
  0xdb   :  { %893 = vmatpush1.bf16.msra.mxu1 %v2692_v47  ;;  %v2779_v47 = vld [vmem:[%s3962_s3 + $0x158] ss:$52 sps:$4 sm:$0xff]  }
  0xdc   :  { %894 = vmatprep.subr.bf16.mxu1 %v2700_v48  ;;  %v2782_v48 = vld [vmem:[%s3962_s3 + $0x160] ss:$52 sps:$4 sm:$0xff]  }
  0xdf   :  { %895 = vmatpush1.bf16.msra.mxu1 %v2698_v49  ;;  %v2787_v49 = vld [vmem:[%s3962_s3 + $0xf4] ss:$52 sps:$4 sm:$0xff]  }
  0xe0   :  { %896 = vmatprep.subr.bf16.mxu1 %v2706_v51  ;;  %v2785_v51 = vld [vmem:[%s3962_s3 + $0xf0] ss:$52 sps:$4 sm:$0xff]  }
  0xe3   :  { %897 = vmatpush1.bf16.msra.mxu1 %v2704_v53  ;;  %v2793_v53 = vld [vmem:[%s3962_s3 + $0x8c] ss:$52 sps:$4 sm:$0xff]  }
  0xe4   :  { %964 = vmatprep.subr.bf16.mxu1 %v2712_v55  ;;  %v2791_v55 = vld [vmem:[%s3962_s3 + $0x88] ss:$52 sps:$4 sm:$0xff]  }
 0x186   :  { %v195_v57 = vpop.f32.mrf.mxu1 }
 0x187   :  { %v199_v58 = vmax.f32 %v195_v57, 0.0  ;;  %v2799_v57 = vld [vmem:[%s3962_s3 + $0x24] ss:$52 sps:$4 sm:$0xff]  }
 0x188   :  { %v2557_v59 = vpop.f32.mrf.mxu1 }
 0x189   :  { %v3057_v62 = vpack.c.bf16 %v199_v58, %v199_v58  ;;  %v2802_v58 = vld [vmem:[%s3962_s3 + $0x2c] ss:$52 sps:$4 sm:$0xff]  }
 0x18a   :  { %v2797_v59 = vld [vmem:[%s3962_s3 + $0x20] ss:$52 sps:$4 sm:$0xff]  }
 0x18b   :  { %874 = vmatmul.mubr.bf16.vlgmr.msra.gmra.mxu0 %v3057_v62  ;;  %915 = vmatmul.mubr.bf16.vlgmr.msra.gmra.mxu1 %v3057_v62 }
 0x18c   :  { %924 = vmatpush1.bf16.msra.mxu0 %v2707_v60  ;;  %965 = vmatpush1.bf16.msra.mxu1 %v2710_v61  ;;  %v2800_v60 = vld [vmem:[%s3962_s3 + $0x28] ss:$52 sps:$4 sm:$0xff]  }
 0x18d   :  { %925 = vmatprep.subr.bf16.mxu0 %v2715_v63  ;;  %966 = vmatprep.subr.bf16.mxu1 %v2718_v1  ;;  %v2803_v61 = vld [vmem:[%s3962_s3 + $0x308] ss:$52 sps:$4 sm:$0xff]   ;;  %v2804_v63 = vld [vmem:[%s3962_s3 + $0x2a0] ss:$52 sps:$4 sm:$0xff]   ;;  %v2805_v1 = vld [vmem:[%s3962_s3 + $0x238] ss:$52 sps:$4 sm:$0xff]  }
 0x18e   :  { %955 = vmatprep.mubr.bf16.mxu0 %v2813_v56  ;;  %996 = vmatprep.mubr.bf16.mxu1 %v2813_v56 }
 0x190   :  { %926 = vmatpush1.bf16.msra.mxu0 %v2713_v3  ;;  %967 = vmatpush1.bf16.msra.mxu1 %v2716_v4  ;;  %v2806_v3 = vld [vmem:[%s3962_s3 + $0x1d0] ss:$52 sps:$4 sm:$0xff]   ;;  %v2807_v4 = vld [vmem:[%s3962_s3 + $0x168] ss:$52 sps:$4 sm:$0xff]  }
 0x191   :  { %927 = vmatprep.subr.bf16.mxu0 %v2721_v5  ;;  %968 = vmatprep.subr.bf16.mxu1 %v2724_v6  ;;  %v2808_v5 = vld [vmem:[%s3962_s3 + $0x100] ss:$52 sps:$4 sm:$0xff]   ;;  %v2809_v6 = vld [vmem:[%s3962_s3 + $0x98] ss:$52 sps:$4 sm:$0xff]  }
 0x194   :  { %928 = vmatpush1.bf16.msra.mxu0 %v2719_v7  ;;  %969 = vmatpush1.bf16.msra.mxu1 %v2722_v8  ;;  %v2810_v7 = vld [vmem:[%s3962_s3 + $0x30] ss:$52 sps:$4 sm:$0xff]   ;;  %v1127_v8 = vld [vmem:[%s3963_s4] sm:$0xf] }
 0x195   :  { %929 = vmatprep.subr.bf16.mxu0 %v2727_v9  ;;  %970 = vmatprep.subr.bf16.mxu1 %v2730_v10  ;;  %v1221_v9 = vld [vmem:[%s3964_s7 + $0x78] sm:$0xff]  ;;  %v1219_v10 = vld [vmem:[%s3964_s7 + $0x68] sm:$0xff] }
 0x198   :  { %930 = vmatpush1.bf16.msra.mxu0 %v2725_v11  ;;  %971 = vmatpush1.bf16.msra.mxu1 %v2728_v12  ;;  %v1217_v11 = vld [vmem:[%s3964_s7 + $0x58] sm:$0xff]  ;;  %v1216_v12 = vld [vmem:[%s3964_s7 + $0x50] sm:$0xff] }
 0x199   :  { %931 = vmatprep.subr.bf16.mxu0 %v2733_v13  ;;  %972 = vmatprep.subr.bf16.mxu1 %v2736_v14  ;;  %v1215_v13 = vld [vmem:[%s3964_s7 + $0x48] sm:$0xff]  ;;  %v1214_v14 = vld [vmem:[%s3964_s7 + $0x40] sm:$0xff] }
 0x19c   :  { %932 = vmatpush1.bf16.msra.mxu0 %v2731_v15  ;;  %973 = vmatpush1.bf16.msra.mxu1 %v2734_v16  ;;  %v1213_v15 = vld [vmem:[%s3964_s7 + $0x38] sm:$0xff]  ;;  %v1212_v16 = vld [vmem:[%s3964_s7 + $0x30] sm:$0xff] }
 0x19d   :  { %933 = vmatprep.subr.bf16.mxu0 %v2739_v17  ;;  %974 = vmatprep.subr.bf16.mxu1 %v2742_v18  ;;  %v1211_v17 = vld [vmem:[%s3964_s7 + $0x28] sm:$0xff]  ;;  %v1210_v18 = vld [vmem:[%s3964_s7 + $0x20] sm:$0xff] }
 0x1a0   :  { %934 = vmatpush1.bf16.msra.mxu0 %v2737_v19  ;;  %975 = vmatpush1.bf16.msra.mxu1 %v2740_v20  ;;  %v1209_v19 = vld [vmem:[%s3964_s7 + $0x18] sm:$0xff]  ;;  %v1208_v20 = vld [vmem:[%s3964_s7 + $0x10] sm:$0xff] }
 0x1a1   :  { %935 = vmatprep.subr.bf16.mxu0 %v2745_v21  ;;  %976 = vmatprep.subr.bf16.mxu1 %v2748_v22  ;;  %v1207_v21 = vld [vmem:[%s3964_s7 + $0x8] sm:$0xff]  ;;  %v1206_v22 = vld [vmem:[%s3964_s7] sm:$0xff] }
 0x1a4   :  { %936 = vmatpush1.bf16.msra.mxu0 %v2743_v23  ;;  %977 = vmatpush1.bf16.msra.mxu1 %v2746_v24  ;;  %v1318_v23 = vld [vmem:[%s3965_s5 + $0xc8] sm:$0xff]  ;;  %v1317_v24 = vld [vmem:[%s3965_s5 + $0xc0] sm:$0xff] }
 0x1a5   :  { %937 = vmatprep.subr.bf16.mxu0 %v2751_v25  ;;  %978 = vmatprep.subr.bf16.mxu1 %v2754_v26  ;;  %v1310_v25 = vld [vmem:[%s3965_s5 + $0x88] sm:$0xff]  ;;  %v1309_v26 = vld [vmem:[%s3965_s5 + $0x80] sm:$0xff] }
 0x1a8   :  { %938 = vmatpush1.bf16.msra.mxu0 %v2749_v27  ;;  %979 = vmatpush1.bf16.msra.mxu1 %v2752_v28 }
 0x1a9   :  { %1005 = vmatprep.subr.bf16.mxu0 %v2757_v29  ;;  %1046 = vmatprep.subr.bf16.mxu1 %v2760_v30 }
 0x1ab   :  { %956 = vmatmul.mubr.bf16.vlgmr.msra.gmra.mxu0 %v3057_v62  ;;  %997 = vmatmul.mubr.bf16.vlgmr.msra.gmra.mxu1 %v3057_v62 }
 0x1ac   :  { %1006 = vmatpush1.bf16.msra.mxu0 %v2755_v31  ;;  %1047 = vmatpush1.bf16.msra.mxu1 %v2758_v32 }
 0x1ad   :  { %1007 = vmatprep.subr.bf16.mxu0 %v2763_v33  ;;  %1048 = vmatprep.subr.bf16.mxu1 %v2766_v34 }
 0x1ae   :  { %1037 = vmatprep.mubr.bf16.mxu0 %v2813_v56  ;;  %1078 = vmatprep.mubr.bf16.mxu1 %v2813_v56  ;;  %v2794_v56 = vld [vmem:[%s3962_s3 + $0x90] ss:$52 sps:$4 sm:$0xff]  }
 0x1b0   :  { %1008 = vmatpush1.bf16.msra.mxu0 %v2761_v35  ;;  %1049 = vmatpush1.bf16.msra.mxu1 %v2764_v36 }
 0x1b1   :  { %1009 = vmatprep.subr.bf16.mxu0 %v2769_v37  ;;  %1050 = vmatprep.subr.bf16.mxu1 %v2772_v38 }
 0x1b4   :  { %1010 = vmatpush1.bf16.msra.mxu0 %v2767_v39  ;;  %1051 = vmatpush1.bf16.msra.mxu1 %v2770_v40 }
 0x1b5   :  { %1011 = vmatprep.subr.bf16.mxu0 %v2775_v41  ;;  %1052 = vmatprep.subr.bf16.mxu1 %v2778_v42 }
 0x1b8   :  { %1012 = vmatpush1.bf16.msra.mxu0 %v2773_v43  ;;  %1053 = vmatpush1.bf16.msra.mxu1 %v2776_v44 }
 0x1b9   :  { %1013 = vmatprep.subr.bf16.mxu0 %v2781_v45  ;;  %1054 = vmatprep.subr.bf16.mxu1 %v2784_v46 }
 0x1bc   :  { %1014 = vmatpush1.bf16.msra.mxu0 %v2779_v47  ;;  %1055 = vmatpush1.bf16.msra.mxu1 %v2782_v48 }
 0x1bd   :  { %1015 = vmatprep.subr.bf16.mxu0 %v2787_v49  ;;  %1056 = vmatprep.subr.bf16.mxu1 %v2790_v50 }
 0x1c0   :  { %1016 = vmatpush1.bf16.msra.mxu0 %v2785_v51  ;;  %1057 = vmatpush1.bf16.msra.mxu1 %v2788_v52 }
 0x1c1   :  { %1017 = vmatprep.subr.bf16.mxu0 %v2793_v53  ;;  %1058 = vmatprep.subr.bf16.mxu1 %v2796_v54 }
 0x1c4   :  { %1018 = vmatpush1.bf16.msra.mxu0 %v2791_v55  ;;  %1059 = vmatpush1.bf16.msra.mxu1 %v2794_v56 }
 0x1c5   :  { %1019 = vmatprep.subr.bf16.mxu0 %v2799_v57  ;;  %1060 = vmatprep.subr.bf16.mxu1 %v2802_v58  ;;  %v1302_v58 = vld [vmem:[%s3965_s5 + $0x48] sm:$0xff] }
 0x1c8   :  { %1020 = vmatpush1.bf16.msra.mxu0 %v2797_v59  ;;  %1061 = vmatpush1.bf16.msra.mxu1 %v2800_v60  ;;  %v1301_v59 = vld [vmem:[%s3965_s5 + $0x40] sm:$0xff]  ;;  %v1294_v60 = vld [vmem:[%s3965_s5 + $0x8] sm:$0xff] }
 0x1c9   :  { %2558 = vmatprep.subr.bf16.mxu0 %v2811_v0  ;;  %1353 = vmatprep.subr.mxu1 %v1318_v23  ;;  %v1625_v23 = vld [vmem:[%s3966_s8 + $0x20] sm:$0xff] }
 0x1cb   :  { %1038 = vmatmul.mubr.bf16.vlgmr.msra.gmra.mxu0 %v3057_v62  ;;  %1079 = vmatmul.mubr.bf16.vlgmr.msra.gmra.mxu1 %v3057_v62 }
 0x1cc   :  { %2559 = vmatpush3.bf16.msra.mxu0 %v2803_v61  ;;  %2574 = vmatprep.mubr.msk.bf16.mxu0 %vm2812_vm1, %v2811_v0  ;;  %v1293_v61 = vld [vmem:[%s3965_s5] sm:$0xff] }
 0x1cd   :  { %2560 = vmatprep.subr.bf16.mxu0 %v2811_v0  ;;  %1393 = vmatprep.mubr.f32.mxu1 %v2811_v0 }
 0x1ce   :  { %1354 = vmatpush1.msra.mxu1 %v1317_v24  ;;  %v1640_v24 = vld [vmem:[%s3966_s8 + $0x98] sm:$0xff] }
 0x1cf   :  { %1355 = vmatprep.subr.mxu1 %v1310_v25  ;;  %v1624_v25 = vld [vmem:[%s3966_s8 + $0x18] sm:$0xff] }
 0x1d0   :  { %2561 = vmatpush3.bf16.msra.mxu0 %v2804_v63  ;;  %1356 = vmatpush1.msra.mxu1 %v1309_v26  ;;  %v1320_v63 = vld [vmem:[%s3965_s5 + $0xd8] sm:$0xff]  ;;  %v1639_v26 = vld [vmem:[%s3966_s8 + $0x90] sm:$0xff] }
 0x1d1   :  { %2562 = vmatprep.subr.bf16.mxu0 %v2811_v0  ;;  %1357 = vmatprep.subr.mxu1 %v1302_v58  ;;  %v1323_v58 = vld [vmem:[%s3965_s5 + $0xf0] sm:$0xff] }
 0x1d2   :  { %1358 = vmatpush1.msra.mxu1 %v1301_v59  ;;  %v1316_v59 = vld [vmem:[%s3965_s5 + $0xb8] sm:$0xff] }
 0x1d3   :  { %1359 = vmatprep.subr.mxu1 %v1294_v60  ;;  %v1315_v60 = vld [vmem:[%s3965_s5 + $0xb0] sm:$0xff] }
 0x1d4   :  { %2563 = vmatpush3.bf16.msra.mxu0 %v2805_v1  ;;  %1360 = vmatpush1.msra.mxu1 %v1293_v61  ;;  %v1652_v1 = vld [vmem:[%s3966_s8 + $0xf8] sm:$0xff] }
 0x1d5   :  { %2564 = vmatprep.subr.bf16.mxu0 %v2811_v0  ;;  %1424 = vmatprep.subr.mxu1 %v1320_v63  ;;  %v1308_v61 = vld [vmem:[%s3965_s5 + $0x78] sm:$0xff]  ;;  %v1307_v63 = vld [vmem:[%s3965_s5 + $0x70] sm:$0xff] }
 0x1d8   :  { %2565 = vmatpush3.bf16.msra.mxu0 %v2806_v3  ;;  %v1636_v3 = vld [vmem:[%s3966_s8 + $0x78] sm:$0xff] }
 0x1d9   :  { %2566 = vmatprep.subr.bf16.mxu0 %v2811_v0 }
 0x1dc   :  { %2567 = vmatpush3.bf16.msra.mxu0 %v2807_v4  ;;  %v1651_v4 = vld [vmem:[%s3966_s8 + $0xf0] sm:$0xff] }
 0x1dd   :  { %2568 = vmatprep.subr.bf16.mxu0 %v2811_v0 }
 0x1e0   :  { %2569 = vmatpush3.bf16.msra.mxu0 %v2808_v5  ;;  %v1635_v5 = vld [vmem:[%s3966_s8 + $0x70] sm:$0xff] }
 0x1e1   :  { %2570 = vmatprep.subr.bf16.mxu0 %v2811_v0 }
 0x1e4   :  { %2571 = vmatpush3.bf16.msra.mxu0 %v2809_v6  ;;  %v1650_v6 = vld [vmem:[%s3966_s8 + $0xe8] sm:$0xff] }
 0x1e5   :  { %2572 = vmatprep.subr.bf16.mxu0 %v2811_v0 }
 0x1e8   :  { %2573 = vmatpush3.bf16.msra.mxu0 %v2810_v7  ;;  %v1634_v7 = vld [vmem:[%s3966_s8 + $0x68] sm:$0xff] }
 0x1e9   :  { %2578 = vmatprep.subr.mxu0 %v2811_v0 }
 0x1eb   :  { %2575 = vmatmul.mubr.bf16.vlgmr.msra.gmra.mxu0 %v3057_v62  ;;  %v1220_v62 = vld [vmem:[%s3964_s7 + $0x70] sm:$0xff] }
 0x1ec   :  { %2579 = vmatpush3.msk.msra.mxu0 %vm1131_vm2, %v1127_v8  ;;  %2580 = vmatprep.mubr.msk.f32.mxu0 %vm2812_vm1, %v2811_v0  ;;  %v1649_v8 = vld [vmem:[%s3966_s8 + $0xe0] sm:$0xff] }
 0x1ed   :  { %2583 = vmatprep.subr.mxu0 %v2811_v0 }
 0x1f3   :  { %2581 = vmatmul.mubr.msk.f32.vlgmr.msra.gmra.mxu0 %vm1128_vm3, %v2878_v2  ;;  %v1218_v2 = vld [vmem:[%s3964_s7 + $0x60] sm:$0xff] }
 0x1f4   :  { %2615 = vmatprep.mubr.msk.f32.mxu0 %vm2812_vm1, %v2811_v0  ;;  %2584 = vmatpush3.msra.mxu0 %v1221_v9  ;;  %v1633_v9 = vld [vmem:[%s3966_s8 + $0x60] sm:$0xff] }
 0x1f5   :  { %2585 = vmatprep.subr.mxu0 %v2811_v0 }
 0x1f6   :  { %2586 = vmatpush3.msra.mxu0 %v1220_v62  ;;  %v1648_v62 = vld [vmem:[%s3966_s8 + $0xd8] sm:$0xff] }
 0x1f7   :  { %2587 = vmatprep.subr.mxu0 %v2811_v0 }
 0x1f8   :  { %2588 = vmatpush3.msra.mxu0 %v1219_v10  ;;  %v1632_v10 = vld [vmem:[%s3966_s8 + $0x58] sm:$0xff] }
 0x1f9   :  { %2589 = vmatprep.subr.mxu0 %v2811_v0 }
 0x1fa   :  { %2590 = vmatpush3.msra.mxu0 %v1218_v2  ;;  %v1647_v2 = vld [vmem:[%s3966_s8 + $0xd0] sm:$0xff] }
 0x1fb   :  { %2591 = vmatprep.subr.mxu0 %v2811_v0 }
 0x1fc   :  { %2592 = vmatpush3.msra.mxu0 %v1217_v11  ;;  %v1631_v11 = vld [vmem:[%s3966_s8 + $0x50] sm:$0xff] }
 0x1fd   :  { %2593 = vmatprep.subr.mxu0 %v2811_v0 }
 0x1fe   :  { %2594 = vmatpush3.msra.mxu0 %v1216_v12  ;;  %v1646_v12 = vld [vmem:[%s3966_s8 + $0xc8] sm:$0xff] }
 0x1ff   :  { %2595 = vmatprep.subr.mxu0 %v2811_v0 }
 0x200   :  { %2596 = vmatpush3.msra.mxu0 %v1215_v13  ;;  %v1630_v13 = vld [vmem:[%s3966_s8 + $0x48] sm:$0xff] }
 0x201   :  { %2597 = vmatprep.subr.mxu0 %v2811_v0 }
 0x202   :  { %2598 = vmatpush3.msra.mxu0 %v1214_v14  ;;  %v1645_v14 = vld [vmem:[%s3966_s8 + $0xc0] sm:$0xff] }
 0x203   :  { %2599 = vmatprep.subr.mxu0 %v2811_v0 }
 0x204   :  { %2600 = vmatpush3.msra.mxu0 %v1213_v15  ;;  %v1629_v15 = vld [vmem:[%s3966_s8 + $0x40] sm:$0xff] }
 0x205   :  { %2601 = vmatprep.subr.mxu0 %v2811_v0 }
 0x206   :  { %2602 = vmatpush3.msra.mxu0 %v1212_v16  ;;  %v1644_v16 = vld [vmem:[%s3966_s8 + $0xb8] sm:$0xff] }
 0x207   :  { %2603 = vmatprep.subr.mxu0 %v2811_v0 }
 0x208   :  { %2604 = vmatpush3.msra.mxu0 %v1211_v17  ;;  %v1628_v17 = vld [vmem:[%s3966_s8 + $0x38] sm:$0xff] }
 0x209   :  { %2605 = vmatprep.subr.mxu0 %v2811_v0 }
 0x20a   :  { %2606 = vmatpush3.msra.mxu0 %v1210_v18  ;;  %v1643_v18 = vld [vmem:[%s3966_s8 + $0xb0] sm:$0xff] }
 0x20b   :  { %2607 = vmatprep.subr.mxu0 %v2811_v0 }
 0x20c   :  { %2608 = vmatpush3.msra.mxu0 %v1209_v19  ;;  %v1627_v19 = vld [vmem:[%s3966_s8 + $0x30] sm:$0xff] }
 0x20d   :  { %2609 = vmatprep.subr.mxu0 %v2811_v0 }
 0x20e   :  { %2610 = vmatpush3.msra.mxu0 %v1208_v20  ;;  %v1642_v20 = vld [vmem:[%s3966_s8 + $0xa8] sm:$0xff] }
 0x20f   :  { %2611 = vmatprep.subr.mxu0 %v2811_v0 }
 0x210   :  { %2612 = vmatpush3.msra.mxu0 %v1207_v21  ;;  %v1626_v21 = vld [vmem:[%s3966_s8 + $0x28] sm:$0xff] }
 0x211   :  { %2613 = vmatprep.subr.mxu0 %v2811_v0 }
 0x212   :  { %2614 = vmatpush3.msra.mxu0 %v1206_v22  ;;  %v1641_v22 = vld [vmem:[%s3966_s8 + $0xa0] sm:$0xff] }
 0x213   :  { %2360 = vmatprep.subr.mxu0 %v1652_v1  ;;  %v1300_v1 = vld [vmem:[%s3965_s5 + $0x38] sm:$0xff] }
 0x24b   :  { %v875_v27 = vpop.f32.mrf.mxu0  ;;  %v3370_v28 = vpop.f32.mrf.mxu1 }
 0x24d   :  { %v3372_v29 = vpop.f32.mrf.mxu0  ;;  %v3374_v30 = vpop.f32.mrf.mxu1 }
 0x24f   :  { %v879_v31 = vpop.f32.mrf.mxu0  ;;  %v920_v32 = vpop.f32.mrf.mxu1 }
 0x251   :  { %v880_v33 = vpop.f32.mrf.mxu0  ;;  %v921_v34 = vpop.f32.mrf.mxu1 }
 0x252   :  { %v1319_v34 = vld [vmem:[%s3965_s5 + $0xd0] sm:$0xff] }
 0x26b   :  { %v3376_v35 = vpop.f32.mrf.mxu0  ;;  %v3378_v36 = vpop.f32.mrf.mxu1 }
 0x26d   :  { %v3380_v37 = vpop.f32.mrf.mxu0  ;;  %v3382_v38 = vpop.f32.mrf.mxu1 }
 0x26f   :  { %v961_v39 = vpop.f32.mrf.mxu0  ;;  %v1002_v40 = vpop.f32.mrf.mxu1 }
 0x270   :  { %v1312_v39 = vld [vmem:[%s3965_s5 + $0x98] sm:$0xff]  ;;  %v1311_v40 = vld [vmem:[%s3965_s5 + $0x90] sm:$0xff] }
 0x271   :  { %v962_v41 = vpop.f32.mrf.mxu0  ;;  %v1003_v42 = vpop.f32.mrf.mxu1 }
 0x272   :  { %v1303_v41 = vld [vmem:[%s3965_s5 + $0x50] sm:$0xff]  ;;  %v1296_v42 = vld [vmem:[%s3965_s5 + $0x18] sm:$0xff] }
 0x28b   :  { %v3384_v43 = vpop.f32.mrf.mxu0  ;;  %v3386_v44 = vpop.f32.mrf.mxu1 }
 0x28d   :  { %v3388_v45 = vpop.f32.mrf.mxu0  ;;  %v3390_v46 = vpop.f32.mrf.mxu1 }
 0x28f   :  { %v1043_v47 = vpop.f32.mrf.mxu0  ;;  %v1084_v48 = vpop.f32.mrf.mxu1 }
 0x290   :  { %v1295_v47 = vld [vmem:[%s3965_s5 + $0x10] sm:$0xff]  ;;  %v1322_v48 = vld [vmem:[%s3965_s5 + $0xe8] sm:$0xff] }
 0x291   :  { %v1044_v49 = vpop.f32.mrf.mxu0  ;;  %v1085_v50 = vpop.f32.mrf.mxu1 }
 0x292   :  { %v1321_v49 = vld [vmem:[%s3965_s5 + $0xe0] sm:$0xff]  ;;  %v1314_v50 = vld [vmem:[%s3965_s5 + $0xa8] sm:$0xff] }
 0x2ab   :  { %v3392_v51 = vpop.f32.mrf.mxu0 }
 0x2ad   :  { %v2576_v52 = vpop.f32.mrf.mxu0 }
 0x2ae   :  { %v1313_v52 = vld [vmem:[%s3965_s5 + $0xa0] sm:$0xff] }
 0x2af   :  { %v1124_v53 = vpop.f32.mrf.mxu0 }
 0x2b0   :  { %v1306_v53 = vld [vmem:[%s3965_s5 + $0x68] sm:$0xff] }
 0x2b1   :  { %v2577_v54 = vpop.f32.mrf.mxu0 }
 0x2b2   :  { %v1305_v54 = vld [vmem:[%s3965_s5 + $0x60] sm:$0xff] }
 0x2b3   :  { %v1201_v55 = vpop.f32.mrf.mxu0 }
 0x2b4   :  { %v1205_v56 = vmul.f32 %v1201_v55, %v875_v27  ;;  %v1298_v55 = vld [vmem:[%s3965_s5 + $0x28] sm:$0xff] }
 0x2b5   :  { %v2582_v57 = vpop.f32.mrf.mxu0 }
 0x2b6   :  { %2616 = vmatmul.mubr.f32.vlgmr.msra.gmra.mxu0 %v1205_v56  ;;  %v1297_v56 = vld [vmem:[%s3965_s5 + $0x20] sm:$0xff]  ;;  %v1324_v57 = vld [vmem:[%s3965_s5 + $0xf8] sm:$0xff] }
 0x2b7   :  { %2361 = vmatpush3.msra.mxu0 %v1636_v3  ;;  %v1299_v3 = vld [vmem:[%s3965_s5 + $0x30] sm:$0xff] }
 0x2b8   :  { %2362 = vmatprep.subr.mxu0 %v1651_v4  ;;  %v1684_v4 = vld [vmem:[%s3966_s8 + $0x1f8] sm:$0xff] }
 0x2b9   :  { %2363 = vmatpush3.msra.mxu0 %v1635_v5  ;;  %v1668_v5 = vld [vmem:[%s3966_s8 + $0x178] sm:$0xff] }
 0x2ba   :  { %2364 = vmatprep.subr.mxu0 %v1650_v6  ;;  %v1683_v6 = vld [vmem:[%s3966_s8 + $0x1f0] sm:$0xff] }
 0x2bb   :  { %2365 = vmatpush3.msra.mxu0 %v1634_v7  ;;  %v1667_v7 = vld [vmem:[%s3966_s8 + $0x170] sm:$0xff] }
 0x2bc   :  { %2366 = vmatprep.subr.mxu0 %v1649_v8  ;;  %v1682_v8 = vld [vmem:[%s3966_s8 + $0x1e8] sm:$0xff] }
 0x2bd   :  { %2367 = vmatpush3.msra.mxu0 %v1633_v9  ;;  %v1666_v9 = vld [vmem:[%s3966_s8 + $0x168] sm:$0xff] }
 0x2be   :  { %2368 = vmatprep.subr.mxu0 %v1648_v62  ;;  %v1681_v62 = vld [vmem:[%s3966_s8 + $0x1e0] sm:$0xff] }
 0x2bf   :  { %2369 = vmatpush3.msra.mxu0 %v1632_v10  ;;  %v1665_v10 = vld [vmem:[%s3966_s8 + $0x160] sm:$0xff] }
 0x2c0   :  { %2370 = vmatprep.subr.mxu0 %v1647_v2  ;;  %v1680_v2 = vld [vmem:[%s3966_s8 + $0x1d8] sm:$0xff] }
 0x2c1   :  { %2371 = vmatpush3.msra.mxu0 %v1631_v11  ;;  %v1664_v11 = vld [vmem:[%s3966_s8 + $0x158] sm:$0xff] }
 0x2c2   :  { %2372 = vmatprep.subr.mxu0 %v1646_v12  ;;  %v1679_v12 = vld [vmem:[%s3966_s8 + $0x1d0] sm:$0xff] }
 0x2c3   :  { %2373 = vmatpush3.msra.mxu0 %v1630_v13  ;;  %v1663_v13 = vld [vmem:[%s3966_s8 + $0x150] sm:$0xff] }
 0x2c4   :  { %2374 = vmatprep.subr.mxu0 %v1645_v14  ;;  %v1678_v14 = vld [vmem:[%s3966_s8 + $0x1c8] sm:$0xff] }
 0x2c5   :  { %2375 = vmatpush3.msra.mxu0 %v1629_v15  ;;  %v1662_v15 = vld [vmem:[%s3966_s8 + $0x148] sm:$0xff] }
 0x2c6   :  { %2376 = vmatprep.subr.mxu0 %v1644_v16  ;;  %v1677_v16 = vld [vmem:[%s3966_s8 + $0x1c0] sm:$0xff] }
 0x2c7   :  { %2377 = vmatpush3.msra.mxu0 %v1628_v17  ;;  %v1661_v17 = vld [vmem:[%s3966_s8 + $0x140] sm:$0xff] }
 0x2c8   :  { %2378 = vmatprep.subr.mxu0 %v1643_v18  ;;  %v1676_v18 = vld [vmem:[%s3966_s8 + $0x1b8] sm:$0xff] }
 0x2c9   :  { %2379 = vmatpush3.msra.mxu0 %v1627_v19  ;;  %v1660_v19 = vld [vmem:[%s3966_s8 + $0x138] sm:$0xff] }
 0x2ca   :  { %2380 = vmatprep.subr.mxu0 %v1642_v20  ;;  %v1675_v20 = vld [vmem:[%s3966_s8 + $0x1b0] sm:$0xff] }
 0x2cb   :  { %2381 = vmatpush3.msra.mxu0 %v1626_v21  ;;  %v1659_v21 = vld [vmem:[%s3966_s8 + $0x130] sm:$0xff] }
 0x2cc   :  { %2382 = vmatprep.subr.mxu0 %v1641_v22  ;;  %v1623_v22 = vld [vmem:[%s3966_s8 + $0x10] sm:$0xff] }
 0x2cd   :  { %2383 = vmatpush3.msra.mxu0 %v1625_v23  ;;  %v1674_v23 = vld [vmem:[%s3966_s8 + $0x1a8] sm:$0xff] }
 0x2ce   :  { %2384 = vmatprep.subr.mxu0 %v1640_v24  ;;  %v1638_v24 = vld [vmem:[%s3966_s8 + $0x88] sm:$0xff] }
 0x2cf   :  { %2385 = vmatpush3.msra.mxu0 %v1624_v25  ;;  %v1658_v25 = vld [vmem:[%s3966_s8 + $0x128] sm:$0xff] }
 0x2d0   :  { %2386 = vmatprep.subr.mxu0 %v1639_v26  ;;  %v1622_v26 = vld [vmem:[%s3966_s8 + $0x8] sm:$0xff] }
 0x2d1   :  { %2387 = vmatpush3.msra.mxu0 %v1623_v22  ;;  %v1707_v22 = vld [vmem:[%s3966_s8 + $0x2b0] sm:$0xff] }
 0x2d2   :  { %2388 = vmatprep.subr.mxu0 %v1638_v24  ;;  %v1691_v24 = vld [vmem:[%s3966_s8 + $0x230] sm:$0xff] }
 0x2d3   :  { %2389 = vmatpush3.msra.mxu0 %v1622_v26 }
 0x376   :  { %v1288_v27 = vpop.f32.mrf.mxu0 }
 0x377   :  { %v1289_v31 = vadd.f32 %v1288_v27, %v3372_v29  ;;  %v1304_v29 = vld [vmem:[%s3965_s5 + $0x58] sm:$0xff]  ;;  %v1673_v27 = vld [vmem:[%s3966_s8 + $0x1a0] sm:$0xff] }
 0x378   :  { %v2617_v32 = vpop.f32.mrf.mxu0 }
 0x379   :  { %v1292_v33 = vmax.f32 %v1289_v31, 0.0  ;;  %v1637_v31 = vld [vmem:[%s3966_s8 + $0x80] sm:$0xff] }
 0x37a   :  { %v1657_v32 = vld [vmem:[%s3966_s8 + $0x120] sm:$0xff]  ;;  %2390 = vmatprep.subr.mxu0 %v1637_v31  ;;  %v1726_v31 = vld [vmem:[%s3966_s8 + $0x348] sm:$0xff] }
 0x37b   :  { %2307 = vmatmul.mubr.msk.f32.vlgmr.msra.gmra.mxu1 %vm1325_vm4, %v1292_v33 }
 0x37c   :  { %1425 = vmatpush1.msra.mxu1 %v1319_v34  ;;  %1464 = vmatprep.mubr.f32.mxu1 %v2811_v0  ;;  %v1672_v34 = vld [vmem:[%s3966_s8 + $0x198] sm:$0xff] }
 0x37d   :  { %1426 = vmatprep.subr.mxu1 %v1312_v39  ;;  %v1656_v39 = vld [vmem:[%s3966_s8 + $0x118] sm:$0xff] }
 0x37e   :  { %1427 = vmatpush1.msra.mxu1 %v1311_v40  ;;  %v1716_v40 = vld [vmem:[%s3966_s8 + $0x2f8] sm:$0xff] }
 0x37f   :  { %1428 = vmatprep.subr.mxu1 %v1304_v29  ;;  %v1671_v29 = vld [vmem:[%s3966_s8 + $0x190] sm:$0xff] }
 0x380   :  { %1429 = vmatpush1.msra.mxu1 %v1303_v41  ;;  %v1655_v41 = vld [vmem:[%s3966_s8 + $0x110] sm:$0xff] }
 0x381   :  { %1430 = vmatprep.subr.mxu1 %v1296_v42  ;;  %v1670_v42 = vld [vmem:[%s3966_s8 + $0x188] sm:$0xff] }
 0x382   :  { %1431 = vmatpush1.msra.mxu1 %v1295_v47  ;;  %v1654_v47 = vld [vmem:[%s3966_s8 + $0x108] sm:$0xff] }
 0x383   :  { %2308 = vmatmul.mubr.msk.f32.vlgmr.msra.gmra.mxu1 %vm1325_vm4, %v1292_v33  ;;  %1495 = vmatprep.subr.mxu1 %v1322_v48  ;;  %v1669_v48 = vld [vmem:[%s3966_s8 + $0x180] sm:$0xff] }
 0x384   :  { %1496 = vmatpush1.msra.mxu1 %v1321_v49  ;;  %1535 = vmatprep.mubr.f32.mxu1 %v2811_v0  ;;  %v1653_v49 = vld [vmem:[%s3966_s8 + $0x100] sm:$0xff] }
 0x385   :  { %1497 = vmatprep.subr.mxu1 %v1314_v50  ;;  %v1748_v50 = vld [vmem:[%s3966_s8 + $0x3f8] sm:$0xff] }
 0x386   :  { %1498 = vmatpush1.msra.mxu1 %v1313_v52 }
 0x387   :  { %1499 = vmatprep.subr.mxu1 %v1306_v53 }
 0x388   :  { %1500 = vmatpush1.msra.mxu1 %v1305_v54 }
 0x389   :  { %1501 = vmatprep.subr.mxu1 %v1298_v55 }
 0x38a   :  { %1502 = vmatpush1.msra.mxu1 %v1297_v56  ;;  %v1700_v56 = vld [vmem:[%s3966_s8 + $0x278] sm:$0xff] }
 0x38b   :  { %2309 = vmatmul.mubr.msk.f32.vlgmr.msra.gmra.mxu1 %vm1325_vm4, %v1292_v33  ;;  %1566 = vmatprep.subr.mxu1 %v1324_v57  ;;  %v1715_v57 = vld [vmem:[%s3966_s8 + $0x2f0] sm:$0xff] }
 0x38c   :  { %1567 = vmatpush1.msra.mxu1 %v1323_v58  ;;  %1606 = vmatprep.mubr.f32.mxu1 %v2811_v0  ;;  %v1699_v58 = vld [vmem:[%s3966_s8 + $0x270] sm:$0xff] }
 0x38d   :  { %1568 = vmatprep.subr.mxu1 %v1316_v59  ;;  %v1698_v59 = vld [vmem:[%s3966_s8 + $0x268] sm:$0xff] }
 0x38e   :  { %1569 = vmatpush1.msra.mxu1 %v1315_v60  ;;  %v1713_v60 = vld [vmem:[%s3966_s8 + $0x2e0] sm:$0xff] }
 0x38f   :  { %1570 = vmatprep.subr.mxu1 %v1308_v61 }
 0x390   :  { %1571 = vmatpush1.msra.mxu1 %v1307_v63  ;;  %v1697_v63 = vld [vmem:[%s3966_s8 + $0x260] sm:$0xff] }
 0x391   :  { %1572 = vmatprep.subr.mxu1 %v1300_v1 }
 0x392   :  { %1573 = vmatpush1.msra.mxu1 %v1299_v3  ;;  %v1712_v3 = vld [vmem:[%s3966_s8 + $0x2d8] sm:$0xff] }
 0x393   :  { %2310 = vmatmul.mubr.msk.f32.vlgmr.msra.gmra.mxu1 %vm1325_vm4, %v1292_v33  ;;  %2395 = vmatprep.subr.mxu1 %v1684_v4  ;;  %v1621_v33 = vld [vmem:[%s3966_s8] sm:$0xff] }
 0x394   :  { %2396 = vmatpush3.msra.mxu1 %v1668_v5  ;;  %2391 = vmatpush3.msra.mxu0 %v1621_v33  ;;  %v1732_v5 = vld [vmem:[%s3966_s8 + $0x378] sm:$0xff]  ;;  %v1741_v33 = vld [vmem:[%s3966_s8 + $0x3c0] sm:$0xff] }
 0x395   :  { %2397 = vmatprep.subr.mxu1 %v1683_v6  ;;  %2430 = vmatprep.subr.mxu0 %v1716_v40  ;;  %v1696_v6 = vld [vmem:[%s3966_s8 + $0x258] sm:$0xff]  ;;  %v1725_v40 = vld [vmem:[%s3966_s8 + $0x340] sm:$0xff] }
 0x396   :  { %2398 = vmatpush3.msra.mxu1 %v1667_v7  ;;  %v1711_v7 = vld [vmem:[%s3966_s8 + $0x2d0] sm:$0xff] }
 0x397   :  { %2399 = vmatprep.subr.mxu1 %v1682_v8  ;;  %v1695_v8 = vld [vmem:[%s3966_s8 + $0x250] sm:$0xff] }
 0x398   :  { %2400 = vmatpush3.msra.mxu1 %v1666_v9  ;;  %v1746_v9 = vld [vmem:[%s3966_s8 + $0x3e8] sm:$0xff] }
 0x399   :  { %2401 = vmatprep.subr.mxu1 %v1681_v62  ;;  %v1710_v62 = vld [vmem:[%s3966_s8 + $0x2c8] sm:$0xff] }
 0x39a   :  { %2402 = vmatpush3.msra.mxu1 %v1665_v10 }
 0x39b   :  { %2403 = vmatprep.subr.mxu1 %v1680_v2  ;;  %v1730_v2 = vld [vmem:[%s3966_s8 + $0x368] sm:$0xff] }
 0x39c   :  { %2404 = vmatpush3.msra.mxu1 %v1664_v11  ;;  %v1694_v11 = vld [vmem:[%s3966_s8 + $0x248] sm:$0xff] }
 0x39d   :  { %2405 = vmatprep.subr.mxu1 %v1679_v12  ;;  %v1745_v12 = vld [vmem:[%s3966_s8 + $0x3e0] sm:$0xff] }
 0x39e   :  { %2406 = vmatpush3.msra.mxu1 %v1663_v13  ;;  %v1709_v13 = vld [vmem:[%s3966_s8 + $0x2c0] sm:$0xff] }
 0x39f   :  { %2407 = vmatprep.subr.mxu1 %v1678_v14 }
 0x3a0   :  { %2408 = vmatpush3.msra.mxu1 %v1662_v15  ;;  %v1729_v15 = vld [vmem:[%s3966_s8 + $0x360] sm:$0xff] }
 0x3a1   :  { %2409 = vmatprep.subr.mxu1 %v1677_v16  ;;  %v1693_v16 = vld [vmem:[%s3966_s8 + $0x240] sm:$0xff] }
 0x3a2   :  { %2410 = vmatpush3.msra.mxu1 %v1661_v17 }
 0x3a3   :  { %2411 = vmatprep.subr.mxu1 %v1676_v18  ;;  %v1744_v18 = vld [vmem:[%s3966_s8 + $0x3d8] sm:$0xff] }
 0x3a4   :  { %2412 = vmatpush3.msra.mxu1 %v1660_v19  ;;  %v1708_v19 = vld [vmem:[%s3966_s8 + $0x2b8] sm:$0xff] }
 0x3a5   :  { %2413 = vmatprep.subr.mxu1 %v1675_v20  ;;  %v1728_v20 = vld [vmem:[%s3966_s8 + $0x358] sm:$0xff] }
 0x3a6   :  { %2414 = vmatpush3.msra.mxu1 %v1659_v21  ;;  %v1743_v21 = vld [vmem:[%s3966_s8 + $0x3d0] sm:$0xff] }
 0x3a7   :  { %2415 = vmatprep.subr.mxu1 %v1674_v23  ;;  %v1727_v23 = vld [vmem:[%s3966_s8 + $0x350] sm:$0xff] }
 0x3a8   :  { %2416 = vmatpush3.msra.mxu1 %v1658_v25  ;;  %v1742_v25 = vld [vmem:[%s3966_s8 + $0x3c8] sm:$0xff] }
 0x3a9   :  { %2417 = vmatprep.subr.mxu1 %v1673_v27  ;;  %v1706_v27 = vld [vmem:[%s3966_s8 + $0x2a8] sm:$0xff] }
 0x3aa   :  { %2418 = vmatpush3.msra.mxu1 %v1657_v32  ;;  %v1690_v32 = vld [vmem:[%s3966_s8 + $0x228] sm:$0xff] }
 0x3ab   :  { %2419 = vmatprep.subr.mxu1 %v1672_v34 }
 0x3ac   :  { %2420 = vmatpush3.msra.mxu1 %v1656_v39  ;;  %v1705_v39 = vld [vmem:[%s3966_s8 + $0x2a0] sm:$0xff] }
 0x3ad   :  { %2421 = vmatprep.subr.mxu1 %v1671_v29 }
 0x3ae   :  { %2422 = vmatpush3.msra.mxu1 %v1655_v41  ;;  %v1689_v41 = vld [vmem:[%s3966_s8 + $0x220] sm:$0xff] }
 0x3af   :  { %2423 = vmatprep.subr.mxu1 %v1670_v42  ;;  %v1740_v42 = vld [vmem:[%s3966_s8 + $0x3b8] sm:$0xff] }
 0x3b0   :  { %2424 = vmatpush3.msra.mxu1 %v1654_v47  ;;  %v1704_v47 = vld [vmem:[%s3966_s8 + $0x298] sm:$0xff] }
 0x3b1   :  { %2425 = vmatprep.subr.mxu1 %v1669_v48  ;;  %v1688_v48 = vld [vmem:[%s3966_s8 + $0x218] sm:$0xff] }
 0x3b2   :  { %2426 = vmatpush3.msra.mxu1 %v1653_v49  ;;  %v1739_v49 = vld [vmem:[%s3966_s8 + $0x3b0] sm:$0xff] }
 0x3b3   :  { %2465 = vmatprep.subr.mxu1 %v1748_v50  ;;  %v1703_v50 = vld [vmem:[%s3966_s8 + $0x290] sm:$0xff] }
 0x43b   :  { %v1395_v52 = vpop.f32.mrf.mxu1 }
 0x43c   :  { %v1613_v55 = vmul.f32 %v1395_v52, %v3370_v28  ;;  %v1723_v52 = vld [vmem:[%s3966_s8 + $0x330] sm:$0xff] }
 0x43d   :  { %v1397_v53 = vpop.f32.mrf.mxu1 }
 0x43e   :  { %v1614_v54 = vmul.f32 %v1397_v53, %v3374_v30  ;;  %v1714_v30 = vld [vmem:[%s3966_s8 + $0x2e8] sm:$0xff]  ;;  %v1687_v53 = vld [vmem:[%s3966_s8 + $0x210] sm:$0xff] }
 0x440   :  { %1813 = vmatprep.mubr.f32.mxu0 %v1614_v54  ;;  %v1738_v54 = vld [vmem:[%s3966_s8 + $0x3a8] sm:$0xff] }
 0x441   :  { %1814 = vmatmul.mubr.f32.vlgmr.msra.gmra.mxu0 %v1613_v55  ;;  %v1702_v55 = vld [vmem:[%s3966_s8 + $0x288] sm:$0xff] }
 0x442   :  { %2431 = vmatpush3.msra.mxu0 %v1700_v56  ;;  %v1722_v56 = vld [vmem:[%s3966_s8 + $0x328] sm:$0xff] }
 0x443   :  { %v1466_v28 = vpop.f32.mrf.mxu1  ;;  %2432 = vmatprep.subr.mxu0 %v1715_v57  ;;  %v1686_v57 = vld [vmem:[%s3966_s8 + $0x208] sm:$0xff] }
 0x444   :  { %2433 = vmatpush3.msra.mxu0 %v1699_v58  ;;  %v1615_v4 = vmul.f32 %v1466_v28, %v3376_v35  ;;  %v1731_v35 = vld [vmem:[%s3966_s8 + $0x370] sm:$0xff]  ;;  %v1737_v58 = vld [vmem:[%s3966_s8 + $0x3a0] sm:$0xff] }
 0x445   :  { %v1468_v61 = vpop.f32.mrf.mxu1  ;;  %2434 = vmatprep.subr.mxu0 %v1714_v30  ;;  %v1701_v30 = vld [vmem:[%s3966_s8 + $0x280] sm:$0xff] }
 0x446   :  { %v1616_v1 = vmul.f32 %v1468_v61, %v3380_v37  ;;  %2435 = vmatpush3.msra.mxu0 %v1698_v59  ;;  %v1747_v37 = vld [vmem:[%s3966_s8 + $0x3f0] sm:$0xff]  ;;  %v1721_v28 = vld [vmem:[%s3966_s8 + $0x320] sm:$0xff] }
 0x447   :  { %2436 = vmatprep.subr.mxu0 %v1713_v60  ;;  %v1685_v59 = vld [vmem:[%s3966_s8 + $0x200] sm:$0xff]  ;;  %v1736_v60 = vld [vmem:[%s3966_s8 + $0x398] sm:$0xff] }
 0x448   :  { %1883 = vmatprep.mubr.f32.mxu1 %v1616_v1  ;;  %2437 = vmatpush3.msra.mxu0 %v1697_v63  ;;  %v1720_v63 = vld [vmem:[%s3966_s8 + $0x318] sm:$0xff]  ;;  %v1735_v1 = vld [vmem:[%s3966_s8 + $0x390] sm:$0xff] }
 0x449   :  { %1884 = vmatmul.mubr.f32.vlgmr.msra.gmra.mxu1 %v1615_v4  ;;  %2438 = vmatprep.subr.mxu0 %v1712_v3  ;;  %v1719_v3 = vld [vmem:[%s3966_s8 + $0x310] sm:$0xff]  ;;  %v1718_v4 = vld [vmem:[%s3966_s8 + $0x308] sm:$0xff] }
 0x44a   :  { %2466 = vmatpush3.msra.mxu1 %v1732_v5  ;;  %2439 = vmatpush3.msra.mxu0 %v1696_v6  ;;  %v1733_v5 = vld [vmem:[%s3966_s8 + $0x380] sm:$0xff] }
 0x44b   :  { %2467 = vmatprep.subr.mxu1 %v1747_v37  ;;  %v3736_v10 = vpop.f32.mrf.mxu1  ;;  %2440 = vmatprep.subr.mxu0 %v1711_v7  ;;  %v1717_v6 = vld [vmem:[%s3966_s8 + $0x300] sm:$0xff]  ;;  %v2033_v7 = vld [vmem:[%s3967_s6 + $0x18] sm:$0xff] }
 0x44c   :  { %2468 = vmatpush3.msra.mxu1 %v1731_v35  ;;  %2441 = vmatpush3.msra.mxu0 %v1695_v8  ;;  %v1617_v61 = vmul.f32 %v3736_v10, %v3378_v36  ;;  %v1734_v36 = vld [vmem:[%s3966_s8 + $0x388] sm:$0xff]  ;;  %v2032_v35 = vld [vmem:[%s3967_s6 + $0x10] sm:$0xff]  ;;  %v2030_v8 = vld [vmem:[%s3967_s6] sm:$0xff] }
 0x44d   :  { %2469 = vmatprep.subr.mxu1 %v1746_v9  ;;  %v1539_v14 = vpop.f32.mrf.mxu1  ;;  %2442 = vmatprep.subr.mxu0 %v1710_v62  ;;  %v2119_v9 = vld [vmem:[%s3968_s9 + $0x58] sm:$0xff]  ;;  %v2118_v62 = vld [vmem:[%s3968_s9 + $0x50] sm:$0xff]  ;;  %v2117_v10 = vld [vmem:[%s3968_s9 + $0x48] sm:$0xff] }
 0x44e   :  { %v1618_v17 = vmul.f32 %v1539_v14, %v3382_v38  ;;  %2470 = vmatpush3.msra.mxu1 %v1730_v2  ;;  %2443 = vmatpush3.msra.mxu0 %v1694_v11  ;;  %v1692_v38 = vld [vmem:[%s3966_s8 + $0x238] sm:$0xff]  ;;  %v2116_v2 = vld [vmem:[%s3968_s9 + $0x40] sm:$0xff] }
 0x44f   :  { %2471 = vmatprep.subr.mxu1 %v1745_v12  ;;  %2444 = vmatprep.subr.mxu0 %v1709_v13  ;;  %v2115_v11 = vld [vmem:[%s3968_s9 + $0x38] sm:$0xff]  ;;  %v2114_v12 = vld [vmem:[%s3968_s9 + $0x30] sm:$0xff]  ;;  %v2113_v13 = vld [vmem:[%s3968_s9 + $0x28] sm:$0xff] }
 0x450   :  { %2472 = vmatpush3.msra.mxu1 %v1729_v15  ;;  %2445 = vmatpush3.msra.mxu0 %v1693_v16  ;;  %v2112_v14 = vld [vmem:[%s3968_s9 + $0x20] sm:$0xff]  ;;  %v2111_v15 = vld [vmem:[%s3968_s9 + $0x18] sm:$0xff]  ;;  %v2110_v16 = vld [vmem:[%s3968_s9 + $0x10] sm:$0xff] }
 0x451   :  { %1953 = vmatprep.mubr.f32.mxu0 %v1618_v17  ;;  %2473 = vmatprep.subr.mxu1 %v1744_v18 }
 0x452   :  { %2446 = vmatprep.subr.mxu0 %v1708_v19  ;;  %2474 = vmatpush3.msra.mxu1 %v1728_v20 }
 0x453   :  { %2447 = vmatpush3.msra.mxu0 %v1692_v38  ;;  %2475 = vmatprep.subr.mxu1 %v1743_v21  ;;  %v3784_v26 = vpop.f32.mrf.mxu1 }
 0x454   :  { %2448 = vmatprep.subr.mxu0 %v1707_v22  ;;  %2476 = vmatpush3.msra.mxu1 %v1727_v23  ;;  %v1619_v37 = vmul.f32 %v3784_v26, %v3384_v43  ;;  %v2031_v43 = vld [vmem:[%s3967_s6 + $0x8] sm:$0xff] }
 0x455   :  { %2449 = vmatpush3.msra.mxu0 %v1691_v24  ;;  %2477 = vmatprep.subr.mxu1 %v1742_v25  ;;  %v1610_v34 = vpop.f32.mrf.mxu1 }
 0x456   :  { %v1620_v29 = vmul.f32 %v1610_v34, %v3388_v45  ;;  %2450 = vmatprep.subr.mxu0 %v1706_v27  ;;  %2478 = vmatpush3.msra.mxu1 %v1726_v31  ;;  %v1724_v45 = vld [vmem:[%s3966_s8 + $0x338] sm:$0xff] }
 0x457   :  { %2451 = vmatpush3.msra.mxu0 %v1690_v32  ;;  %2479 = vmatprep.subr.mxu1 %v1741_v33 }
 0x458   :  { %2452 = vmatprep.subr.mxu0 %v1705_v39  ;;  %2480 = vmatpush3.msra.mxu1 %v1725_v40  ;;  %v2109_v40 = vld [vmem:[%s3968_s9 + $0x8] sm:$0xff] }
 0x459   :  { %2453 = vmatpush3.msra.mxu0 %v1689_v41  ;;  %2481 = vmatprep.subr.mxu1 %v1740_v42 }
 0x45a   :  { %2023 = vmatprep.mubr.f32.mxu1 %v1620_v29  ;;  %2454 = vmatprep.subr.mxu0 %v1704_v47 }
 0x45b   :  { %2482 = vmatpush3.msra.mxu1 %v1724_v45  ;;  %2455 = vmatpush3.msra.mxu0 %v1688_v48 }
 0x45c   :  { %2483 = vmatprep.subr.mxu1 %v1739_v49  ;;  %2456 = vmatprep.subr.mxu0 %v1703_v50 }
 0x45d   :  { %2484 = vmatpush3.msra.mxu1 %v1723_v52  ;;  %2457 = vmatpush3.msra.mxu0 %v1687_v53 }
 0x45e   :  { %2485 = vmatprep.subr.mxu1 %v1738_v54  ;;  %2458 = vmatprep.subr.mxu0 %v1702_v55 }
 0x45f   :  { %2486 = vmatpush3.msra.mxu1 %v1722_v56  ;;  %2459 = vmatpush3.msra.mxu0 %v1686_v57 }
 0x460   :  { %2487 = vmatprep.subr.mxu1 %v1737_v58  ;;  %2460 = vmatprep.subr.mxu0 %v1701_v30 }
 0x461   :  { %2488 = vmatpush3.msra.mxu1 %v1721_v28  ;;  %2461 = vmatpush3.msra.mxu0 %v1685_v59 }
 0x462   :  { %2489 = vmatprep.subr.mxu1 %v1736_v60  ;;  %1954 = vmatmul.mubr.f32.vlgmr.msra.gmra.mxu0 %v1617_v61 }
 0x463   :  { %2490 = vmatpush3.msra.mxu1 %v1720_v63  ;;  %2618 = vmatprep.subr.mxu0 %v2811_v0 }
 0x464   :  { %2491 = vmatprep.subr.mxu1 %v1735_v1  ;;  %2626 = vmatprep.mubr.msk.f32.mxu0 %vm2812_vm1, %v2811_v0 }
 0x465   :  { %2492 = vmatpush3.msra.mxu1 %v1719_v3  ;;  %2619 = vmatpush3.msra.mxu0 %v2033_v7 }
 0x466   :  { %2493 = vmatprep.subr.mxu1 %v1734_v36  ;;  %2620 = vmatprep.subr.mxu0 %v2811_v0 }
 0x467   :  { %2494 = vmatpush3.msra.mxu1 %v1718_v4  ;;  %2621 = vmatpush3.msra.mxu0 %v2032_v35 }
 0x468   :  { %2495 = vmatprep.subr.mxu1 %v1733_v5  ;;  %2622 = vmatprep.subr.mxu0 %v2811_v0 }
 0x469   :  { %2496 = vmatpush3.msra.mxu1 %v1717_v6  ;;  %2623 = vmatpush3.msra.mxu0 %v2031_v43 }
 0x46a   :  { %2024 = vmatmul.mubr.f32.vlgmr.msra.gmra.mxu1 %v1619_v37  ;;  %2629 = vmatprep.subr.mxu1 %v2811_v0 }
 0x46b   :  { %2653 = vmatprep.mubr.msk.f32.mxu1 %vm2812_vm1, %v2811_v0  ;;  %2624 = vmatprep.subr.mxu0 %v2811_v0 }
 0x46c   :  { %2625 = vmatpush3.msra.mxu0 %v2030_v8  ;;  %2630 = vmatpush3.msra.mxu1 %v2119_v9 }
 0x46d   :  { %2631 = vmatprep.subr.mxu1 %v2811_v0 }
 0x46e   :  { %2632 = vmatpush3.msra.mxu1 %v2118_v62 }
 0x46f   :  { %2633 = vmatprep.subr.mxu1 %v2811_v0 }
 0x470   :  { %2634 = vmatpush3.msra.mxu1 %v2117_v10 }
 0x471   :  { %2635 = vmatprep.subr.mxu1 %v2811_v0 }
 0x472   :  { %2636 = vmatpush3.msra.mxu1 %v2116_v2 }
 0x473   :  { %2637 = vmatprep.subr.mxu1 %v2811_v0 }
 0x474   :  { %2638 = vmatpush3.msra.mxu1 %v2115_v11 }
 0x475   :  { %2639 = vmatprep.subr.mxu1 %v2811_v0 }
 0x476   :  { %2640 = vmatpush3.msra.mxu1 %v2114_v12 }
 0x477   :  { %2641 = vmatprep.subr.mxu1 %v2811_v0 }
 0x478   :  { %2642 = vmatpush3.msra.mxu1 %v2113_v13 }
 0x479   :  { %2643 = vmatprep.subr.mxu1 %v2811_v0 }
 0x47a   :  { %2644 = vmatpush3.msra.mxu1 %v2112_v14 }
 0x47b   :  { %2645 = vmatprep.subr.mxu1 %v2811_v0 }
 0x47c   :  { %2646 = vmatpush3.msra.mxu1 %v2111_v15 }
 0x47d   :  { %2647 = vmatprep.subr.mxu1 %v2811_v0 }
 0x47e   :  { %2648 = vmatpush3.msra.mxu1 %v2110_v16 }
 0x47f   :  { %2649 = vmatprep.subr.mxu1 %v2811_v0 }
 0x480   :  { %2650 = vmatpush3.msra.mxu1 %v2109_v40 }
 0x481   :  { %2651 = vmatprep.subr.mxu1 %v2811_v0 }
 0x501   :  { %v2392_v17 = vpop.f32.mrf.mxu0 }
 0x503   :  { %v2393_v18 = vpop.f32.mrf.mxu0 }
 0x504   :  { %v2394_v21 = vadd.f32 %v2393_v18, %v2392_v17 }
 0x506   :  { %v1816_v24 = vadd.f32 %v2394_v21, %v3386_v44  ;;  %v2108_v44 = vld [vmem:[%s3968_s9] sm:$0xff] }
 0x507   :  { %2652 = vmatpush3.msra.mxu1 %v2108_v44 }
 0x509   :  { %v2427_v19 = vpop.f32.mrf.mxu1 }
 0x50b   :  { %v2428_v38 = vpop.f32.mrf.mxu1 }
 0x50c   :  { %v2429_v23 = vadd.f32 %v2428_v38, %v2427_v19 }
 0x50e   :  { %v1886_v27 = vadd.f32 %v2429_v23, %v1816_v24 }
 0x522   :  { %v2462_v20 = vpop.f32.mrf.mxu0 }
 0x524   :  { %v2463_v22 = vpop.f32.mrf.mxu0 }
 0x525   :  { %v2464_v25 = vadd.f32 %v2463_v22, %v2462_v20 }
 0x527   :  { %v1956_v32 = vadd.f32 %v2464_v25, %v1886_v27 }
 0x52a   :  { %v2497_v26 = vpop.f32.mrf.mxu1 }
 0x52c   :  { %v2498_v31 = vpop.f32.mrf.mxu1 }
 0x52d   :  { %v2499_v33 = vadd.f32 %v2498_v31, %v2497_v26 }
 0x52f   :  { %v2026_v34 = vadd.f32 %v2499_v33, %v1956_v32 }
 0x531   :  { %v2029_v39 = vmax.f32 %v2026_v34, 0.0 }
 0x533   :  { %2627 = vmatmul.mubr.msk.f32.vlgmr.msra.gmra.mxu0 %vm1325_vm4, %v2029_v39 }
 0x5f3   :  { %v2103_v29 = vpop.f32.mrf.mxu0 }
 0x5f4   :  { %v2107_v41 = vmul.f32 %v2103_v29, %v3390_v46 }
 0x5f5   :  { %v2628_v42 = vpop.f32.mrf.mxu0 }
 0x5f6   :  { %2654 = vmatmul.mubr.msk.f32.vlgmr.msra.gmra.mxu1 %vm2120_vm5, %v2107_v41 }
 0x6b6   :  { %v2190_v47 = vpop.f32.mrf.mxu1 }
 0x6b7   :  { %v2191_v45 = vadd.f32 %v2190_v47, %v3392_v51 }
 0x6b8   :  { %v2655_v48 = vpop.f32.mrf.mxu1 }
 0x6b9   :  { %2195 = vst.msk [vmem:[%s3969_s10] sm:$0xff] %vm2194_vm6, %v2191_v45 }

</bundles_post_ra>
